<compile_context>
chip_gen: v7x
topology: tpu7x:2x2x1
jax: 0.10.0
libtpu: 0.0.40
codegen_flags: <defaults>
</compile_context>

<pallas_src>
import functools

import numpy as np
import jax
import jax.numpy as jnp
from jax.experimental import pallas as pl
from jax.experimental.pallas import tpu as pltpu


# ----------------------------- layout helpers (static) ------------------------ #

def _heights(config):
    h0 = config['window_size']; fw = config['filter_width']; m = config['max1d_width']
    hc1 = h0 - fw + 1;  hp1 = hc1 - m + 1
    hc2 = hp1 - fw + 1; hp2 = hc2 - m + 1
    hc3 = hp2 - fw + 1; hp3 = hc3 - m + 1
    return hc1, hp1, hc2, hp2, hc3, hp3


def _layout(config):
    """Per-layer conv-output lane widths and 128-aligned offsets inside the
    packed channel-selector slabs."""
    wd = config['nb_channels']; f = config['conv_filters']
    hc1, _, hc2, _, hc3, _ = _heights(config)
    wcv = (hc1 * wd * f, hc2 * wd * f, hc3 * wd * f)
    offs, cur = [], 0
    for w in wcv:
        offs.append(cur)
        cur += ((w + 127) // 128) * 128
    return wcv, tuple(offs), cur


# --------------------- fused Pallas kernel (whole forward) -------------------- #

def _fused_forward_kernel(
    scal_ref,                                   # SMEM (4,): [1/n1, 1/n2, 1/n3, eps]
    x_ref,                                      # (B, H0*Wd) f32
    wt1_ref, wt2_ref, wt3_ref,                  # Toeplitz conv matrices, bf16
    sel_ref,                                    # (Wpack, F) bf16 channel selectors
    selt_ref,                                   # (F, Wpack) bf16 (= sel.T)
    gb_ref,                                     # (6, F) f32: [g1,b1,g2,b2,g3,b3]
    wfc1_ref, wfc2_ref,                         # bf16 fc weights
    bias_ref,                                   # (2, FC) f32: [bfc1 ; bfc2 padded]
    out_ref,                                    # (B, NC) f32
    *, wcv, offs, wdf, m, nc):

    eps = scal_ref[3]
    gb = gb_ref[...]

    def conv_bn_relu_pool(a, wt_ref, layer):
        off, w = offs[layer], wcv[layer]
        inv_n = scal_ref[layer]
        g = gb[2 * layer:2 * layer + 1, :]
        be = gb[2 * layer + 1:2 * layer + 2, :]
        # Conv2d([FW,1]) as one Toeplitz matmul (conv bias dropped: exactly
        # cancelled by the train-mode BN mean subtraction).
        y = jnp.dot(a.astype(jnp.bfloat16), wt_ref[...],
                    preferred_element_type=jnp.float32)                    # (B, w) f32
        # Train-mode BatchNorm2d stats over (batch, height, width):
        # one fused selector matmul gives per-channel sum and sum-of-squares.
        stats = jnp.concatenate(
            [jnp.sum(y, axis=0, keepdims=True),
             jnp.sum(y * y, axis=0, keepdims=True)], axis=0)               # (2, w)
        red = jnp.dot(stats.astype(jnp.bfloat16), sel_ref[off:off + w, :],
                      preferred_element_type=jnp.float32) * inv_n          # (2, F)
        mu, ex2 = red[0:1, :], red[1:2, :]
        var = jnp.maximum(ex2 - mu * mu, 0.0)     # clamp: one-pass var can dip < 0
        scale = g * jax.lax.rsqrt(var + eps)      # gamma folded into scale
        shift = be - mu * scale
        # One fused broadcast matmul expands (scale, shift) back to lane width.
        ssf = jnp.dot(jnp.concatenate([scale, shift], axis=0).astype(jnp.bfloat16),
                      selt_ref[:, off:off + w],
                      preferred_element_type=jnp.float32)                  # (2, w)
        y = jnp.maximum(y * ssf[0:1, :] + ssf[1:2, :], 0.0)                # BN + ReLU
        # MaxPool2d([m,1], stride=1) over height: elementwise max of lane-shifted
        # copies (pure wd*F-lane shift; no permutation matmuls / constants).
        wp = w - (m - 1) * wdf
        p = y[:, 0:wp]
        for mm in range(1, m):
            p = jnp.maximum(p, y[:, mm * wdf:mm * wdf + wp])
        # TODO(synk): nn.Dropout(p=drop_prob) after each pool is omitted (inference identity).
        return p

    a = x_ref[...]                                                         # (B, H0*Wd)
    a = conv_bn_relu_pool(a, wt1_ref, 0)
    a = conv_bn_relu_pool(a, wt2_ref, 1)
    a = conv_bn_relu_pool(a, wt3_ref, 2)
    # fc1 (PyTorch's channel-major flatten pre-folded into wfc1's columns) + ReLU
    h = jnp.maximum(
        jnp.dot(a.astype(jnp.bfloat16), wfc1_ref[...],
                preferred_element_type=jnp.float32) + bias_ref[0:1, :], 0.0)
    # fc2 (plain Linear)
    out = jnp.dot(h.astype(jnp.bfloat16), wfc2_ref[...],
                  preferred_element_type=jnp.float32) + bias_ref[1:2, 0:nc]
    out_ref[...] = out.astype(out_ref.dtype)


# ------------------ one-time parameter prep (host side, not hot path) --------- #

def _conv_toeplitz(w, h_in, wd):
    """w: (Cout, Cin, FW) numpy.  Returns (h_in*wd*Cin, h_out*wd*Cout) matrix
    implementing Conv2d([FW,1], stride 1, VALID) on the (h, w, ci)-interleaved
    lane layout (column index = (h*wd + w)*Cin + ci)."""
    cout, cin, fw = w.shape
    h_out = h_in - fw + 1
    t = np.zeros((h_in * wd * cin, h_out * wd * cout), np.float32)
    for ho in range(h_out):
        for k in range(fw):
            for wi in range(wd):
                src = ((ho + k) * wd + wi) * cin
                dst = (ho * wd + wi) * cout
                t[src:src + cin, dst:dst + cout] = w[:, :, k].T
    return t


def _channel_selector(h, wd, f):
    """S[(h*wd+w)*f + c, c] = 1.  stats @ S reduces over (h, w) per channel;
    v @ S.T broadcasts a per-channel (·, f) row back to full lane width."""
    return np.tile(np.eye(f, dtype=np.float32), (h * wd, 1))


def init_params(config, key):
    wd = config['nb_channels']
    f = config['conv_filters']
    fw = config['filter_width']
    fc = config['fc_filters']
    nc = config['nb_classes']
    _, _, _, _, _, hp3 = _heights(config)
    fc_in = hp3 * f * wd

    ks = jax.random.split(key, 7)
    return {
        # Conv2d weights, PyTorch layout (out_ch, in_ch, kH, kW=1).  Conv biases
        # omitted: with train-mode BatchNorm right after each conv they are exactly
        # cancelled by the mean subtraction.
        'w1': jax.random.normal(ks[0], (f, 1, fw, 1), jnp.float32) * 0.1,
        'w2': jax.random.normal(ks[1], (f, f, fw, 1), jnp.float32) * 0.1,
        'w3': jax.random.normal(ks[2], (f, f, fw, 1), jnp.float32) * 0.1,
        # Linear weights, PyTorch layout (out_features, in_features)
        'wfc1': jax.random.normal(ks[3], (fc, fc_in), jnp.float32) * 0.1,
        'bfc1': jax.random.normal(ks[4], (fc,), jnp.float32) * 0.01,
        'wfc2': jax.random.normal(ks[5], (nc, fc), jnp.float32) * 0.1,
        'bfc2': jax.random.normal(ks[6], (nc,), jnp.float32) * 0.01,
        # BatchNorm2d affine params (PyTorch default init: weight=1, bias=0)
        'g1': jnp.ones((f,), jnp.float32), 'be1': jnp.zeros((f,), jnp.float32),
        'g2': jnp.ones((f,), jnp.float32), 'be2': jnp.zeros((f,), jnp.float32),
        'g3': jnp.ones((f,), jnp.float32), 'be3': jnp.zeros((f,), jnp.float32),
    }


def prepare_constants(params, config):
    """One-time parameter prep: conv weights -> bf16 Toeplitz matmul matrices,
    packed channel-selector slabs, packed gamma/beta and fc biases, fc1 columns
    permuted to absorb the channel-major flatten."""
    wd = config['nb_channels']
    h0 = config['window_size']
    f = config['conv_filters']
    fc = config['fc_filters']
    nc = config['nb_classes']
    hc1, hp1, hc2, hp2, hc3, hp3 = _heights(config)
    _, offs, wpack = _layout(config)

    w1 = np.asarray(params['w1'], np.float32)[:, :, :, 0]
    w2 = np.asarray(params['w2'], np.float32)[:, :, :, 0]
    w3 = np.asarray(params['w3'], np.float32)[:, :, :, 0]
    wfc1 = np.asarray(params['wfc1'], np.float32)
    wfc2 = np.asarray(params['wfc2'], np.float32)
    assert wfc1.shape[1] == hp3 * wd * f and fc >= nc

    wt1 = _conv_toeplitz(w1, h0, wd)     # (h0*wd,       hc1*wd*f)
    wt2 = _conv_toeplitz(w2, hp1, wd)    # (hp1*wd*f,    hc2*wd*f)
    wt3 = _conv_toeplitz(w3, hp2, wd)    # (hp2*wd*f,    hc3*wd*f)

    # Packed 0/1 channel-selector slabs (one per layer, 128-aligned offsets).
    sel_all = np.zeros((wpack, f), np.float32)
    for off, hc in zip(offs, (hc1, hc2, hc3)):
        s = _channel_selector(hc, wd, f)
        sel_all[off:off + s.shape[0], :] = s
    selt_all = np.ascontiguousarray(sel_all.T)

    # gamma/beta packed: rows [g1, be1, g2, be2, g3, be3]
    gb = np.stack([np.asarray(params[k], np.float32)
                   for k in ('g1', 'be1', 'g2', 'be2', 'g3', 'be3')], axis=0)

    # fc biases packed into one (2, FC) buffer (bfc2 zero-padded to FC lanes).
    biases = np.zeros((2, fc), np.float32)
    biases[0, :] = np.asarray(params['bfc1'], np.float32)
    biases[1, :nc] = np.asarray(params['bfc2'], np.float32)

    # Fold PyTorch's flatten order (f, h, w) into the fc1 weight; our activation
    # lane layout is (h, w, f)-interleaved.
    idx = np.arange(hp3 * wd * f)
    fch = idx % f
    rest = idx // f
    w_i = rest % wd
    h_i = rest // wd
    pt_col = fch * (hp3 * wd) + h_i * wd + w_i
    wfc1p = wfc1[:, pt_col].T          # (hp3*wd*f, FC)
    wfc2t = wfc2.T                     # (FC, NC)

    bf = lambda a: jnp.asarray(a, jnp.bfloat16)   # exact for 0/1 selectors/Toeplitz pattern
    f32 = lambda a: jnp.asarray(a, jnp.float32)
    return [bf(wt1), bf(wt2), bf(wt3), bf(sel_all), bf(selt_all),
            f32(gb), bf(wfc1p), bf(wfc2t), f32(biases)]


# ------------------------------- forward wrapper ------------------------------ #

def cnn2d_c3f1_forward(x, consts, config):
    wd = config['nb_channels']
    h0 = config['window_size']
    f = config['conv_filters']
    nc = config['nb_classes']
    m = config['max1d_width']
    hc1, _, hc2, _, hc3, _ = _heights(config)
    wcv, offs, _ = _layout(config)

    # x.view(-1, 1, window_size, nb_channels) -> flatten (h, w) into lanes.
    x2 = jnp.reshape(x, (-1, h0 * wd)).astype(jnp.float32)
    b = x2.shape[0]
    # BN reduce counts + eps as SMEM scalars (scalar slot is idle anyway).
    scalars = jnp.array([1.0 / (b * hc1 * wd), 1.0 / (b * hc2 * wd),
                         1.0 / (b * hc3 * wd), 1e-5], jnp.float32)

    kernel = functools.partial(_fused_forward_kernel, wcv=wcv, offs=offs,
                               wdf=wd * f, m=m, nc=nc)
    vmem = pl.BlockSpec(memory_space=pltpu.MemorySpace.VMEM)
    smem = pl.BlockSpec(memory_space=pltpu.MemorySpace.SMEM)
    # VMEM budget: ~0.6 MB of bf16 constants + tiny activations; well inside the
    # 32 MiB scoped default and v7x's 64 MiB physical VMEM.  Re-derive if
    # window_size / conv_filters / nb_channels grow (Toeplitz ~quadratic in h*wd*f).
    return pl.pallas_call(
        kernel,
        out_shape=jax.ShapeDtypeStruct((b, nc), jnp.float32),
        in_specs=[smem] + [vmem] * (1 + len(consts)),
        out_specs=vmem,
        compiler_params=pltpu.CompilerParams(vmem_limit_bytes=32 * 1024 * 1024),
    )(scalars, x2, *consts)


# ------------------------- plain-JAX reference (correctness) ------------------ #

def reference_forward(x, params, config):
    wd = config['nb_channels']; h0 = config['window_size']; m = config['max1d_width']
    hi = jax.lax.Precision.HIGHEST
    x = jnp.reshape(x, (-1, 1, h0, wd)).astype(jnp.float32)

    def block(h, w, g, be):
        y = jax.lax.conv_general_dilated(h, w, (1, 1), 'VALID',
                                         dimension_numbers=('NCHW', 'OIHW', 'NCHW'),
                                         precision=hi)
        mu = jnp.mean(y, axis=(0, 2, 3), keepdims=True)
        var = jnp.mean((y - mu) ** 2, axis=(0, 2, 3), keepdims=True)
        y = (y - mu) * jax.lax.rsqrt(var + 1e-5) * g.reshape(1, -1, 1, 1) + be.reshape(1, -1, 1, 1)
        y = jnp.maximum(y, 0.0)
        return jax.lax.reduce_window(y, -jnp.inf, jax.lax.max,
                                     (1, 1, m, 1), (1, 1, 1, 1), 'VALID')

    h = block(x, params['w1'], params['g1'], params['be1'])
    h = block(h, params['w2'], params['g2'], params['be2'])
    h = block(h, params['w3'], params['g3'], params['be3'])
    h = h.reshape(h.shape[0], -1)
    h = jnp.maximum(jnp.dot(h, params['wfc1'].T, precision=hi) + params['bfc1'], 0.0)
    return jnp.dot(h, params['wfc2'].T, precision=hi) + params['bfc2']


# ----------------------------------- main ------------------------------------- #

if __name__ == "__main__":
    config = {
        'window_size': 16,
        'drop_prob': 0.5,       # dropout is identity here (inference)
        'nb_channels': 4,
        'nb_classes': 6,
        'seed': 0,
        'conv_filters': 8,
        'fc_filters': 32,
        'filter_width': 3,
        'max1d_width': 2,       # MaxPool2d([2,1], stride=1)
    }

    key = jax.random.PRNGKey(0)
    k_x, k_p = jax.random.split(key)
    params = init_params(config, k_p)
    consts = prepare_constants(params, config)

    # Input (batch, window_size, nb_channels); forward views it as (B, 1, 16, 4).
    x = jax.random.normal(k_x, (2, config['window_size'], config['nb_channels']),
                          jnp.float32)

    out = jax.block_until_ready(cnn2d_c3f1_forward(x, consts, config))
    assert out.shape == (2, config['nb_classes'])
    assert bool(jnp.all(jnp.isfinite(out)))

    ref = jax.block_until_ready(reference_forward(x, params, config))
    assert ref.shape == out.shape
    assert float(jnp.max(jnp.abs(out - ref))) < 5e-2, "mismatch vs plain-JAX reference"

    print("KERNEL_OK")
</pallas_src>

<mosaic_0001>
module attributes {stable_mosaic.version = 11 : i64} {
  func.func @_fused_forward_kernel(%arg0: memref<4xf32, #tpu.memory_space<smem>>, %arg1: memref<2x64xf32, #tpu.memory_space<vmem>>, %arg2: memref<64x448xbf16, #tpu.memory_space<vmem>>, %arg3: memref<416x352xbf16, #tpu.memory_space<vmem>>, %arg4: memref<320x256xbf16, #tpu.memory_space<vmem>>, %arg5: memref<1152x8xbf16, #tpu.memory_space<vmem>>, %arg6: memref<8x1152xbf16, #tpu.memory_space<vmem>>, %arg7: memref<6x8xf32, #tpu.memory_space<vmem>>, %arg8: memref<224x32xbf16, #tpu.memory_space<vmem>>, %arg9: memref<32x6xbf16, #tpu.memory_space<vmem>>, %arg10: memref<2x32xf32, #tpu.memory_space<vmem>>, %arg11: memref<2x6xf32, #tpu.memory_space<vmem>>) attributes {dimension_semantics = [], scalar_prefetch = 0 : i64, scratch_operands = 0 : i64, tpu.core_type = #tpu.core_type<tc>} {
    %c3 = arith.constant 3 : index
    %0 = memref.load %arg0[%c3] : memref<4xf32, #tpu.memory_space<smem>>
    %c0 = arith.constant 0 : index
    %c0_0 = arith.constant 0 : index
    %1 = vector.load %arg7[%c0, %c0_0] : memref<6x8xf32, #tpu.memory_space<vmem>>, vector<6x8xf32>
    %c0_1 = arith.constant 0 : index
    %c0_2 = arith.constant 0 : index
    %2 = vector.load %arg1[%c0_1, %c0_2] : memref<2x64xf32, #tpu.memory_space<vmem>>, vector<2x64xf32>
    %c0_3 = arith.constant 0 : index
    %3 = memref.load %arg0[%c0_3] : memref<4xf32, #tpu.memory_space<smem>>
    %4 = vector.extract_strided_slice %1 {offsets = [0, 0], sizes = [1, 8], strides = [1, 1]} : vector<6x8xf32> to vector<1x8xf32>
    %5 = vector.extract_strided_slice %1 {offsets = [1, 0], sizes = [1, 8], strides = [1, 1]} : vector<6x8xf32> to vector<1x8xf32>
    %6 = arith.truncf %2 : vector<2x64xf32> to vector<2x64xbf16>
    %c0_4 = arith.constant 0 : index
    %c0_5 = arith.constant 0 : index
    %7 = vector.load %arg2[%c0_4, %c0_5] : memref<64x448xbf16, #tpu.memory_space<vmem>>, vector<64x448xbf16>
    %cst = arith.constant dense<0.000000e+00> : vector<2x448xf32>
    %8 = tpu.matmul %6, %7, %cst {dimension_numbers = #tpu.dot_dimension_numbers<[1], [0], [0], [1], [0, 0, 1, 1], [], []>} : vector<2x64xbf16>, vector<64x448xbf16>, vector<2x448xf32> -> vector<2x448xf32>
    %cst_6 = arith.constant dense<0.000000e+00> : vector<448xf32>
    %9 = vector.multi_reduction <add>, %8, %cst_6 [0] : vector<2x448xf32> to vector<448xf32>
    %10 = vector.shape_cast %9 : vector<448xf32> to vector<1x448xf32>
    %11 = arith.mulf %8, %8 : vector<2x448xf32>
    %cst_7 = arith.constant dense<0.000000e+00> : vector<448xf32>
    %12 = vector.multi_reduction <add>, %11, %cst_7 [0] : vector<2x448xf32> to vector<448xf32>
    %13 = vector.shape_cast %12 : vector<448xf32> to vector<1x448xf32>
    %14 = tpu.concatenate %10, %13 in 0 : vector<1x448xf32>, vector<1x448xf32> -> vector<2x448xf32>
    %15 = arith.truncf %14 : vector<2x448xf32> to vector<2x448xbf16>
    %c0_8 = arith.constant 0 : index
    %c0_9 = arith.constant 0 : index
    %16 = vector.load %arg5[%c0_8, %c0_9] : memref<1152x8xbf16, #tpu.memory_space<vmem>>, vector<448x8xbf16>
    %cst_10 = arith.constant dense<0.000000e+00> : vector<2x8xf32>
    %17 = tpu.matmul %15, %16, %cst_10 {dimension_numbers = #tpu.dot_dimension_numbers<[1], [0], [0], [1], [0, 0, 1, 1], [], []>} : vector<2x448xbf16>, vector<448x8xbf16>, vector<2x8xf32> -> vector<2x8xf32>
    %18 = vector.broadcast %3 : f32 to vector<2x8xf32>
    %19 = arith.mulf %17, %18 : vector<2x8xf32>
    %20 = vector.extract_strided_slice %19 {offsets = [0, 0], sizes = [1, 8], strides = [1, 1]} : vector<2x8xf32> to vector<1x8xf32>
    %21 = vector.extract_strided_slice %19 {offsets = [1, 0], sizes = [1, 8], strides = [1, 1]} : vector<2x8xf32> to vector<1x8xf32>
    %22 = arith.mulf %20, %20 : vector<1x8xf32>
    %23 = arith.subf %21, %22 : vector<1x8xf32>
    %cst_11 = arith.constant 0.000000e+00 : f32
    %24 = vector.broadcast %cst_11 : f32 to vector<1x8xf32>
    %25 = arith.maximumf %23, %24 : vector<1x8xf32>
    %26 = vector.broadcast %0 : f32 to vector<1x8xf32>
    %27 = arith.addf %25, %26 : vector<1x8xf32>
    %28 = math.rsqrt %27 : vector<1x8xf32>
    %29 = arith.mulf %4, %28 : vector<1x8xf32>
    %30 = arith.mulf %20, %29 : vector<1x8xf32>
    %31 = arith.subf %5, %30 : vector<1x8xf32>
    %32 = tpu.concatenate %29, %31 in 0 : vector<1x8xf32>, vector<1x8xf32> -> vector<2x8xf32>
    %33 = arith.truncf %32 : vector<2x8xf32> to vector<2x8xbf16>
    %c0_12 = arith.constant 0 : index
    %c0_13 = arith.constant 0 : index
    %34 = vector.load %arg6[%c0_12, %c0_13] : memref<8x1152xbf16, #tpu.memory_space<vmem>>, vector<8x448xbf16>
    %cst_14 = arith.constant dense<0.000000e+00> : vector<2x448xf32>
    %35 = tpu.matmul %33, %34, %cst_14 {dimension_numbers = #tpu.dot_dimension_numbers<[1], [0], [0], [1], [0, 0, 1, 1], [], []>} : vector<2x8xbf16>, vector<8x448xbf16>, vector<2x448xf32> -> vector<2x448xf32>
    %36 = vector.extract_strided_slice %35 {offsets = [0, 0], sizes = [1, 448], strides = [1, 1]} : vector<2x448xf32> to vector<1x448xf32>
    %37 = vector.broadcast %36 : vector<1x448xf32> to vector<2x448xf32>
    %38 = arith.mulf %8, %37 : vector<2x448xf32>
    %39 = vector.extract_strided_slice %35 {offsets = [1, 0], sizes = [1, 448], strides = [1, 1]} : vector<2x448xf32> to vector<1x448xf32>
    %40 = vector.broadcast %39 : vector<1x448xf32> to vector<2x448xf32>
    %41 = arith.addf %38, %40 : vector<2x448xf32>
    %cst_15 = arith.constant 0.000000e+00 : f32
    %42 = vector.broadcast %cst_15 : f32 to vector<2x448xf32>
    %43 = arith.maximumf %41, %42 : vector<2x448xf32>
    %44 = vector.extract_strided_slice %43 {offsets = [0, 0], sizes = [2, 416], strides = [1, 1]} : vector<2x448xf32> to vector<2x416xf32>
    %45 = vector.extract_strided_slice %43 {offsets = [0, 32], sizes = [2, 416], strides = [1, 1]} : vector<2x448xf32> to vector<2x416xf32>
    %46 = arith.maximumf %44, %45 : vector<2x416xf32>
    %c1 = arith.constant 1 : index
    %47 = memref.load %arg0[%c1] : memref<4xf32, #tpu.memory_space<smem>>
    %48 = vector.extract_strided_slice %1 {offsets = [2, 0], sizes = [1, 8], strides = [1, 1]} : vector<6x8xf32> to vector<1x8xf32>
    %49 = vector.extract_strided_slice %1 {offsets = [3, 0], sizes = [1, 8], strides = [1, 1]} : vector<6x8xf32> to vector<1x8xf32>
    %50 = arith.truncf %46 : vector<2x416xf32> to vector<2x416xbf16>
    %c0_16 = arith.constant 0 : index
    %c0_17 = arith.constant 0 : index
    %51 = vector.load %arg3[%c0_16, %c0_17] : memref<416x352xbf16, #tpu.memory_space<vmem>>, vector<416x352xbf16>
    %cst_18 = arith.constant dense<0.000000e+00> : vector<2x352xf32>
    %52 = tpu.matmul %50, %51, %cst_18 {dimension_numbers = #tpu.dot_dimension_numbers<[1], [0], [0], [1], [0, 0, 1, 1], [], []>} : vector<2x416xbf16>, vector<416x352xbf16>, vector<2x352xf32> -> vector<2x352xf32>
    %cst_19 = arith.constant dense<0.000000e+00> : vector<352xf32>
    %53 = vector.multi_reduction <add>, %52, %cst_19 [0] : vector<2x352xf32> to vector<352xf32>
    %54 = vector.shape_cast %53 : vector<352xf32> to vector<1x352xf32>
    %55 = arith.mulf %52, %52 : vector<2x352xf32>
    %cst_20 = arith.constant dense<0.000000e+00> : vector<352xf32>
    %56 = vector.multi_reduction <add>, %55, %cst_20 [0] : vector<2x352xf32> to vector<352xf32>
    %57 = vector.shape_cast %56 : vector<352xf32> to vector<1x352xf32>
    %58 = tpu.concatenate %54, %57 in 0 : vector<1x352xf32>, vector<1x352xf32> -> vector<2x352xf32>
    %59 = arith.truncf %58 : vector<2x352xf32> to vector<2x352xbf16>
    %c512 = arith.constant 512 : index
    %c0_21 = arith.constant 0 : index
    %60 = vector.load %arg5[%c512, %c0_21] : memref<1152x8xbf16, #tpu.memory_space<vmem>>, vector<352x8xbf16>
    %cst_22 = arith.constant dense<0.000000e+00> : vector<2x8xf32>
    %61 = tpu.matmul %59, %60, %cst_22 {dimension_numbers = #tpu.dot_dimension_numbers<[1], [0], [0], [1], [0, 0, 1, 1], [], []>} : vector<2x352xbf16>, vector<352x8xbf16>, vector<2x8xf32> -> vector<2x8xf32>
    %62 = vector.broadcast %47 : f32 to vector<2x8xf32>
    %63 = arith.mulf %61, %62 : vector<2x8xf32>
    %64 = vector.extract_strided_slice %63 {offsets = [0, 0], sizes = [1, 8], strides = [1, 1]} : vector<2x8xf32> to vector<1x8xf32>
    %65 = vector.extract_strided_slice %63 {offsets = [1, 0], sizes = [1, 8], strides = [1, 1]} : vector<2x8xf32> to vector<1x8xf32>
    %66 = arith.mulf %64, %64 : vector<1x8xf32>
    %67 = arith.subf %65, %66 : vector<1x8xf32>
    %cst_23 = arith.constant 0.000000e+00 : f32
    %68 = vector.broadcast %cst_23 : f32 to vector<1x8xf32>
    %69 = arith.maximumf %67, %68 : vector<1x8xf32>
    %70 = vector.broadcast %0 : f32 to vector<1x8xf32>
    %71 = arith.addf %69, %70 : vector<1x8xf32>
    %72 = math.rsqrt %71 : vector<1x8xf32>
    %73 = arith.mulf %48, %72 : vector<1x8xf32>
    %74 = arith.mulf %64, %73 : vector<1x8xf32>
    %75 = arith.subf %49, %74 : vector<1x8xf32>
    %76 = tpu.concatenate %73, %75 in 0 : vector<1x8xf32>, vector<1x8xf32> -> vector<2x8xf32>
    %77 = arith.truncf %76 : vector<2x8xf32> to vector<2x8xbf16>
    %c0_24 = arith.constant 0 : index
    %c512_25 = arith.constant 512 : index
    %78 = vector.load %arg6[%c0_24, %c512_25] : memref<8x1152xbf16, #tpu.memory_space<vmem>>, vector<8x352xbf16>
    %cst_26 = arith.constant dense<0.000000e+00> : vector<2x352xf32>
    %79 = tpu.matmul %77, %78, %cst_26 {dimension_numbers = #tpu.dot_dimension_numbers<[1], [0], [0], [1], [0, 0, 1, 1], [], []>} : vector<2x8xbf16>, vector<8x352xbf16>, vector<2x352xf32> -> vector<2x352xf32>
    %80 = vector.extract_strided_slice %79 {offsets = [0, 0], sizes = [1, 352], strides = [1, 1]} : vector<2x352xf32> to vector<1x352xf32>
    %81 = vector.broadcast %80 : vector<1x352xf32> to vector<2x352xf32>
    %82 = arith.mulf %52, %81 : vector<2x352xf32>
    %83 = vector.extract_strided_slice %79 {offsets = [1, 0], sizes = [1, 352], strides = [1, 1]} : vector<2x352xf32> to vector<1x352xf32>
    %84 = vector.broadcast %83 : vector<1x352xf32> to vector<2x352xf32>
    %85 = arith.addf %82, %84 : vector<2x352xf32>
    %cst_27 = arith.constant 0.000000e+00 : f32
    %86 = vector.broadcast %cst_27 : f32 to vector<2x352xf32>
    %87 = arith.maximumf %85, %86 : vector<2x352xf32>
    %88 = vector.extract_strided_slice %87 {offsets = [0, 0], sizes = [2, 320], strides = [1, 1]} : vector<2x352xf32> to vector<2x320xf32>
    %89 = vector.extract_strided_slice %87 {offsets = [0, 32], sizes = [2, 320], strides = [1, 1]} : vector<2x352xf32> to vector<2x320xf32>
    %90 = arith.maximumf %88, %89 : vector<2x320xf32>
    %c2 = arith.constant 2 : index
    %91 = memref.load %arg0[%c2] : memref<4xf32, #tpu.memory_space<smem>>
    %92 = vector.extract_strided_slice %1 {offsets = [4, 0], sizes = [1, 8], strides = [1, 1]} : vector<6x8xf32> to vector<1x8xf32>
    %93 = vector.extract_strided_slice %1 {offsets = [5, 0], sizes = [1, 8], strides = [1, 1]} : vector<6x8xf32> to vector<1x8xf32>
    %94 = arith.truncf %90 : vector<2x320xf32> to vector<2x320xbf16>
    %c0_28 = arith.constant 0 : index
    %c0_29 = arith.constant 0 : index
    %95 = vector.load %arg4[%c0_28, %c0_29] : memref<320x256xbf16, #tpu.memory_space<vmem>>, vector<320x256xbf16>
    %cst_30 = arith.constant dense<0.000000e+00> : vector<2x256xf32>
    %96 = tpu.matmul %94, %95, %cst_30 {dimension_numbers = #tpu.dot_dimension_numbers<[1], [0], [0], [1], [0, 0, 1, 1], [], []>} : vector<2x320xbf16>, vector<320x256xbf16>, vector<2x256xf32> -> vector<2x256xf32>
    %cst_31 = arith.constant dense<0.000000e+00> : vector<256xf32>
    %97 = vector.multi_reduction <add>, %96, %cst_31 [0] : vector<2x256xf32> to vector<256xf32>
    %98 = vector.shape_cast %97 : vector<256xf32> to vector<1x256xf32>
    %99 = arith.mulf %96, %96 : vector<2x256xf32>
    %cst_32 = arith.constant dense<0.000000e+00> : vector<256xf32>
    %100 = vector.multi_reduction <add>, %99, %cst_32 [0] : vector<2x256xf32> to vector<256xf32>
    %101 = vector.shape_cast %100 : vector<256xf32> to vector<1x256xf32>
    %102 = tpu.concatenate %98, %101 in 0 : vector<1x256xf32>, vector<1x256xf32> -> vector<2x256xf32>
    %103 = arith.truncf %102 : vector<2x256xf32> to vector<2x256xbf16>
    %c896 = arith.constant 896 : index
    %c0_33 = arith.constant 0 : index
    %104 = vector.load %arg5[%c896, %c0_33] : memref<1152x8xbf16, #tpu.memory_space<vmem>>, vector<256x8xbf16>
    %cst_34 = arith.constant dense<0.000000e+00> : vector<2x8xf32>
    %105 = tpu.matmul %103, %104, %cst_34 {dimension_numbers = #tpu.dot_dimension_numbers<[1], [0], [0], [1], [0, 0, 1, 1], [], []>} : vector<2x256xbf16>, vector<256x8xbf16>, vector<2x8xf32> -> vector<2x8xf32>
    %106 = vector.broadcast %91 : f32 to vector<2x8xf32>
    %107 = arith.mulf %105, %106 : vector<2x8xf32>
    %108 = vector.extract_strided_slice %107 {offsets = [0, 0], sizes = [1, 8], strides = [1, 1]} : vector<2x8xf32> to vector<1x8xf32>
    %109 = vector.extract_strided_slice %107 {offsets = [1, 0], sizes = [1, 8], strides = [1, 1]} : vector<2x8xf32> to vector<1x8xf32>
    %110 = arith.mulf %108, %108 : vector<1x8xf32>
    %111 = arith.subf %109, %110 : vector<1x8xf32>
    %cst_35 = arith.constant 0.000000e+00 : f32
    %112 = vector.broadcast %cst_35 : f32 to vector<1x8xf32>
    %113 = arith.maximumf %111, %112 : vector<1x8xf32>
    %114 = vector.broadcast %0 : f32 to vector<1x8xf32>
    %115 = arith.addf %113, %114 : vector<1x8xf32>
    %116 = math.rsqrt %115 : vector<1x8xf32>
    %117 = arith.mulf %92, %116 : vector<1x8xf32>
    %118 = arith.mulf %108, %117 : vector<1x8xf32>
    %119 = arith.subf %93, %118 : vector<1x8xf32>
    %120 = tpu.concatenate %117, %119 in 0 : vector<1x8xf32>, vector<1x8xf32> -> vector<2x8xf32>
    %121 = arith.truncf %120 : vector<2x8xf32> to vector<2x8xbf16>
    %c0_36 = arith.constant 0 : index
    %c896_37 = arith.constant 896 : index
    %122 = vector.load %arg6[%c0_36, %c896_37] : memref<8x1152xbf16, #tpu.memory_space<vmem>>, vector<8x256xbf16>
    %cst_38 = arith.constant dense<0.000000e+00> : vector<2x256xf32>
    %123 = tpu.matmul %121, %122, %cst_38 {dimension_numbers = #tpu.dot_dimension_numbers<[1], [0], [0], [1], [0, 0, 1, 1], [], []>} : vector<2x8xbf16>, vector<8x256xbf16>, vector<2x256xf32> -> vector<2x256xf32>
    %124 = vector.extract_strided_slice %123 {offsets = [0, 0], sizes = [1, 256], strides = [1, 1]} : vector<2x256xf32> to vector<1x256xf32>
    %125 = vector.broadcast %124 : vector<1x256xf32> to vector<2x256xf32>
    %126 = arith.mulf %96, %125 : vector<2x256xf32>
    %127 = vector.extract_strided_slice %123 {offsets = [1, 0], sizes = [1, 256], strides = [1, 1]} : vector<2x256xf32> to vector<1x256xf32>
    %128 = vector.broadcast %127 : vector<1x256xf32> to vector<2x256xf32>
    %129 = arith.addf %126, %128 : vector<2x256xf32>
    %cst_39 = arith.constant 0.000000e+00 : f32
    %130 = vector.broadcast %cst_39 : f32 to vector<2x256xf32>
    %131 = arith.maximumf %129, %130 : vector<2x256xf32>
    %132 = vector.extract_strided_slice %131 {offsets = [0, 0], sizes = [2, 224], strides = [1, 1]} : vector<2x256xf32> to vector<2x224xf32>
    %133 = vector.extract_strided_slice %131 {offsets = [0, 32], sizes = [2, 224], strides = [1, 1]} : vector<2x256xf32> to vector<2x224xf32>
    %134 = arith.maximumf %132, %133 : vector<2x224xf32>
    %135 = arith.truncf %134 : vector<2x224xf32> to vector<2x224xbf16>
    %c0_40 = arith.constant 0 : index
    %c0_41 = arith.constant 0 : index
    %136 = vector.load %arg8[%c0_40, %c0_41] : memref<224x32xbf16, #tpu.memory_space<vmem>>, vector<224x32xbf16>
    %cst_42 = arith.constant dense<0.000000e+00> : vector<2x32xf32>
    %137 = tpu.matmul %135, %136, %cst_42 {dimension_numbers = #tpu.dot_dimension_numbers<[1], [0], [0], [1], [0, 0, 1, 1], [], []>} : vector<2x224xbf16>, vector<224x32xbf16>, vector<2x32xf32> -> vector<2x32xf32>
    %c0_43 = arith.constant 0 : index
    %c0_44 = arith.constant 0 : index
    %138 = vector.load %arg10[%c0_43, %c0_44] : memref<2x32xf32, #tpu.memory_space<vmem>>, vector<1x32xf32>
    %139 = vector.broadcast %138 : vector<1x32xf32> to vector<2x32xf32>
    %140 = arith.addf %137, %139 : vector<2x32xf32>
    %cst_45 = arith.constant 0.000000e+00 : f32
    %141 = vector.broadcast %cst_45 : f32 to vector<2x32xf32>
    %142 = arith.maximumf %140, %141 : vector<2x32xf32>
    %143 = arith.truncf %142 : vector<2x32xf32> to vector<2x32xbf16>
    %c0_46 = arith.constant 0 : index
    %c0_47 = arith.constant 0 : index
    %144 = vector.load %arg9[%c0_46, %c0_47] : memref<32x6xbf16, #tpu.memory_space<vmem>>, vector<32x6xbf16>
    %cst_48 = arith.constant dense<0.000000e+00> : vector<2x6xf32>
    %145 = tpu.matmul %143, %144, %cst_48 {dimension_numbers = #tpu.dot_dimension_numbers<[1], [0], [0], [1], [0, 0, 1, 1], [], []>} : vector<2x32xbf16>, vector<32x6xbf16>, vector<2x6xf32> -> vector<2x6xf32>
    %c1_49 = arith.constant 1 : index
    %c0_50 = arith.constant 0 : index
    %146 = vector.load %arg10[%c1_49, %c0_50] : memref<2x32xf32, #tpu.memory_space<vmem>>, vector<1x6xf32>
    %147 = vector.broadcast %146 : vector<1x6xf32> to vector<2x6xf32>
    %148 = arith.addf %145, %147 : vector<2x6xf32>
    %c0_51 = arith.constant 0 : index
    %c0_52 = arith.constant 0 : index
    %149 = vector.load %arg11[%c0_51, %c0_52] : memref<2x6xf32, #tpu.memory_space<vmem>>, vector<2x6xf32>
    tpu.vector_store %arg11[%c0_51, %c0_52], %148 {strides = array<i32>} : memref<2x6xf32, #tpu.memory_space<vmem>>, vector<2x6xf32>,
    return
  }
}

</mosaic_0001>

<bundles_post_ra>
// kernel: tpu_custom_call.1
= control target key start
LH: loop header
LB: loop body
LE: loop exit
PB: predicated region body
PF: predicated region fallthrough
CT: control target
= control target key end

     0   :  { %16 = vsyncpa [#allocation5], 0  ;;  %s4590_s0 = inlined_call_operand.hbm [shape: f32[4], index: 0, kind: input, shape index: {}]   ;;  %s4591_s1 = inlined_call_operand.vmem [shape: f32[2,64], index: 1, kind: input, shape index: {}]   ;;  %s4592_s2 = inlined_call_operand.vmem [shape: bf16[64,448], index: 2, kind: input, shape index: {}]   ;;  %s4593_s3 = inlined_call_operand.vmem [shape: bf16[416,352], index: 3, kind: input, shape index: {}]   ;;  %s4594_s4 = inlined_call_operand.hbm [shape: bf16[320,256], index: 4, kind: input, shape index: {}]   ;;  %s4595_s5 = inlined_call_operand.vmem [shape: bf16[1152,8], index: 5, kind: input, shape index: {}]   ;;  %s4596_s6 = inlined_call_operand.hbm [shape: bf16[8,1152], index: 6, kind: input, shape index: {}]   ;;  %s4597_s7 = inlined_call_operand.vmem [shape: f32[6,8], index: 7, kind: input, shape index: {}]   ;;  %s4598_s8 = inlined_call_operand.vmem [shape: bf16[224,32], index: 8, kind: input, shape index: {}]   ;;  %s4599_s9 = inlined_call_operand.vmem [shape: bf16[32,6], index: 9, kind: input, shape index: {}]   ;;  %s4600_s10 = inlined_call_operand.vmem [shape: f32[2,32], index: 10, kind: input, shape index: {}]   ;;  %s4601_s11 = inlined_call_operand.hbm [shape: f32[2,6], index: 11, kind: output, shape index: {}]  }
   0x1   :  { %17 = vsyncpa [#allocation3], 0 }
   0x2   :  { %18 = vsyncpa [#allocation8], 0 }
   0x3   :  { %19 = vsyncpa [#allocation4], 0  ;;  %s3616_s19 = scalar_lea.hbm %s4590_s0, 16 }
   0x4   :  { %p3617_p0 = scmp.ne.s32.totalorder %s4590_s0, %s3616_s19  ;;  %p3620_p1 = scmp.lt.u32.totalorder %s3616_s19, %s4590_s0 }
   0x6   :  { %p3622_p2 = pnand %p3620_p1, %p3617_p0 }
   0x8   :  { %3625 = shalt.err (!%p3622_p2)
}
   0x9   :  { %s3700_s24 = smov [#allocation2]   ;;  %s3701_s27 = smov [#allocation6]  }
   0xa   :  { %27 = dma.hbm_to_smem %s4590_s0, 16, %s3700_s24, [#allocation5]  }
   0xb   :  { %s39_s28 = sshll.u32 %s3701_s27, 4  ;;  %s3626_s12 = scalar_lea.hbm %s4594_s4, 5120  ;;  %s40_s28 = int_to_ptr.vmem [resolvable:$true] %s39_s28 }
   0xc   :  { %p3627_p3 = scmp.ne.s32.totalorder %s4594_s4, %s3626_s12  ;;  %p3630_p4 = scmp.lt.u32.totalorder %s3626_s12, %s4594_s4 }
   0xe   :  { %p3632_p5 = pnand %p3630_p4, %p3627_p3 }
  0x10   :  { %3635 = shalt.err (!%p3632_p5)
}
  0x11   :  { %s3636_s17 = scalar_lea.vmem %s40_s28, 5120  ;;  %p3641_p7 = scmp.lt.s32.totalorder %s40_s28, %s40_s28 }
  0x12   :  { %p3637_p6 = scmp.ne.s32.totalorder %s40_s28, %s3636_s17  ;;  %p3642_p8 = scmp.lt.s32.totalorder %s3636_s17, %s3636_s17 }
  0x14   :  { %p3643_p9 = por %p3642_p8, %p3641_p7 }
  0x16   :  { %p3644_p10 = pnand %p3643_p9, %p3637_p6 }
  0x18   :  { %3647 = shalt.err (!%p3644_p10)
}
  0x19   :  { %s3702_s0 = smov 128   ;;  %s3703_s18 = smov 8  }
  0x1a   :  { %45 = dma.hbm_to_vmem [thread:$0]  %s4594_s4, 5120, %s40_s28, [#allocation3], %s3702_s0, %s3702_s0, %s3703_s18  }
  0x1b   :  { %s3704_s21 = smov [#allocation7]   ;;  %s3648_s25 = scalar_lea.hbm %s4596_s6, 576 }
  0x1c   :  { %s54_s22 = sshll.u32 %s3704_s21, 4  ;;  %p3649_p11 = scmp.ne.s32.totalorder %s4596_s6, %s3648_s25  ;;  %s55_s22 = int_to_ptr.vmem [resolvable:$true] %s54_s22 }
  0x1d   :  { %p3652_p12 = scmp.lt.u32.totalorder %s3648_s25, %s4596_s6 }
  0x1f   :  { %p3654_p13 = pnand %p3652_p12, %p3649_p11 }
  0x21   :  { %3657 = shalt.err (!%p3654_p13)
}
  0x22   :  { %s3658_s12 = scalar_lea.vmem %s55_s22, 576  ;;  %p3663_p1 = scmp.lt.s32.totalorder %s55_s22, %s55_s22 }
  0x23   :  { %p3659_p0 = scmp.ne.s32.totalorder %s55_s22, %s3658_s12  ;;  %p3664_p2 = scmp.lt.s32.totalorder %s3658_s12, %s3658_s12 }
  0x25   :  { %p3665_p3 = por %p3664_p2, %p3663_p1 }
  0x27   :  { %p3666_p4 = pnand %p3665_p3, %p3659_p0 }
  0x29   :  { %3669 = shalt.err (!%p3666_p4)
}
  0x2a   :  { %57 = dma.hbm_to_vmem [thread:$0]  %s4596_s6, 576, %s55_s22, [#allocation8]  }
  0x2b   :  { %3692 = dma.done.wait [#allocation5], 16  }
  0x2c   :  { %3693 = vsyncadd [#allocation5], 4294967280 }
  0x2d   :  { %3694 = dma.done.wait [#allocation3], 5120  }
  0x2e   :  { %3695 = vsyncadd [#allocation3], 4294962176 }
  0x2f   :  { %3696 = dma.done.wait [#allocation8], 576  }
  0x30   :  { %3697 = vsyncadd [#allocation8], 4294966720 }
  0x31   :  { %75 = sfence }
  0x32   :  { %v3330_v0 = vld [vmem:[%s4592_s2 + $0x4] ss:$16 sps:$4 sm:$0xff]   ;;  %v3332_v1 = vld [vmem:[%s4592_s2 + $0xc] ss:$16 sps:$4 sm:$0xff]   ;;  %v3705_v2 = vmov 0   ;;  %vm178_vm0 = vcmask 523264  }
  0x33   :  { %214 = vmatprep.mubr.bf16.mxu0 %v3705_v2  ;;  %255 = vmatprep.mubr.bf16.mxu1 %v3705_v2  ;;  %v3334_v3 = vld [vmem:[%s4592_s2] ss:$16 sps:$4 sm:$0xff]   ;;  %v3335_v4 = vld [vmem:[%s4592_s2 + $0x8] ss:$16 sps:$4 sm:$0xff]   ;;  %v3336_v5 = vld [vmem:[%s4592_s2 + $0x24] ss:$16 sps:$4 sm:$0xff]  }
  0x34   :  { %182 = vmatprep.subr.bf16.mxu0 %v3330_v0  ;;  %223 = vmatprep.subr.bf16.mxu1 %v3332_v1  ;;  %v3338_v6 = vld [vmem:[%s4592_s2 + $0x2c] ss:$16 sps:$4 sm:$0xff]   ;;  %v3340_v7 = vld [vmem:[%s4592_s2 + $0x20] ss:$16 sps:$4 sm:$0xff]   ;;  %v3341_v8 = vld [vmem:[%s4592_s2 + $0x28] ss:$16 sps:$4 sm:$0xff]  }
  0x35   :  { %183 = vmatpush1.bf16.msra.mxu0 %v3334_v3  ;;  %224 = vmatpush1.bf16.msra.mxu1 %v3335_v4  ;;  %v3342_v9 = vld [vmem:[%s4592_s2 + $0x44] ss:$16 sps:$4 sm:$0xff]   ;;  %v3344_v10 = vld [vmem:[%s4592_s2 + $0x4c] ss:$16 sps:$4 sm:$0xff]   ;;  %v3346_v11 = vld [vmem:[%s4592_s2 + $0x40] ss:$16 sps:$4 sm:$0xff]  }
  0x36   :  { %184 = vmatprep.subr.bf16.mxu0 %v3336_v5  ;;  %225 = vmatprep.subr.bf16.mxu1 %v3338_v6  ;;  %v3347_v12 = vld [vmem:[%s4592_s2 + $0x48] ss:$16 sps:$4 sm:$0xff]   ;;  %v3348_v13 = vld [vmem:[%s4592_s2 + $0x64] ss:$16 sps:$4 sm:$0xff]   ;;  %v3350_v14 = vld [vmem:[%s4592_s2 + $0x6c] ss:$16 sps:$4 sm:$0xff]  }
  0x37   :  { %v3352_v15 = vld [vmem:[%s4592_s2 + $0x60] ss:$16 sps:$4 sm:$0xff]   ;;  %v3353_v16 = vld [vmem:[%s4592_s2 + $0x68] ss:$16 sps:$4 sm:$0xff]   ;;  %vm264_vm1 = vcmask 1041408   ;;  %vm286_vm2 = vcmask 517120  }
  0x38   :  { %v79_v17 = vld [vmem:[%s4591_s1] sm:$0x3]  ;;  %v3361_v22 = vld [vmem:[%s4595_s5 + $0x48] sm:$0xff]   ;;  %v3364_v25 = vld [vmem:[%s4595_s5 + $0x50] sm:$0xff]   ;;  %vm326_vm3 = vcmask 1040384   ;;  %vm680_vm4 = vcmask 1043456  }
  0x39   :  { %185 = vmatpush1.bf16.msra.mxu0 %v3340_v7  ;;  %226 = vmatpush1.bf16.msra.mxu1 %v3341_v8  ;;  %v3354_v18 = vld [vmem:[%s4595_s5 + $0x80] sm:$0xff]   ;;  %v81_v19 = vpack.c.bf16 %v79_v17, %v79_v17  ;;  %v3355_v23 = vld [vmem:[%s4595_s5 + $0x88] sm:$0xff]   ;;  %v3356_v26 = vld [vmem:[%s4595_s5 + $0x90] sm:$0xff]   ;;  %s80_s30 = sld [smem:[#allocation2]]  ;;  %s2919_s12 = sld [smem:[#allocation2 + $0x3]]  ;;  %vm676_vm5 = vcmask 64512  }
  0x3a   :  { %186 = vmatprep.subr.bf16.mxu0 %v3342_v9  ;;  %227 = vmatprep.subr.bf16.mxu1 %v3344_v10  ;;  %v3358_v20 = vld [vmem:[%s4595_s5 + $0x40] sm:$0xff]   ;;  %v3362_v24 = vld [vmem:[%s4595_s5 + $0x8] sm:$0xff]   ;;  %v3365_v27 = vld [vmem:[%s4595_s5 + $0x10] sm:$0xff]   ;;  %s3706_s15 = smov 96   ;;  %vm831_vm6 = vcmask 785408   ;;  %vm1368_vm7 = vcmask 261120  }
  0x3b   :  { %v3359_v21 = vld [vmem:[%s4595_s5] sm:$0xff]   ;;  %v3357_v28 = vld [vmem:[%s4595_s5 + $0x98] sm:$0xff]   ;;  %v3363_v30 = vld [vmem:[%s4595_s5 + $0xa8] sm:$0xff]   ;;  %vm3708_vm8 = vmmov 0   ;;  %vm1548_vm9 = vcmask 779264   ;;  %s2975_s22 = sld [smem:[#allocation2 + $0x1]] }
  0x3c   :  { %v3360_v29 = vld [vmem:[%s4595_s5 + $0xa0] sm:$0xff]   ;;  %v3366_v31 = vld [vmem:[%s4595_s5 + $0xb0] sm:$0xff]   ;;  %v3367_v32 = vld [vmem:[%s4595_s5 + $0x58] sm:$0xff]   ;;  %s3709_s17 = smov [#allocation9]   ;;  %vm2900_vm10 = vcmask 41984  }
  0x3d   :  { %187 = vmatpush1.bf16.msra.mxu0 %v3346_v11  ;;  %228 = vmatpush1.bf16.msra.mxu1 %v3347_v12  ;;  %v3368_v33 = vld [vmem:[%s4595_s5 + $0x18] sm:$0xff]   ;;  %v3370_v35 = vld [vmem:[%s4595_s5 + $0x60] sm:$0xff]   ;;  %v3373_v38 = vld [vmem:[%s4595_s5 + $0x68] sm:$0xff]  }
  0x3e   :  { %188 = vmatprep.subr.bf16.mxu0 %v3348_v13  ;;  %229 = vmatprep.subr.bf16.mxu1 %v3350_v14  ;;  %v3369_v34 = vld [vmem:[%s4595_s5 + $0xb8] sm:$0xff]   ;;  %v3371_v36 = vld [vmem:[%s4595_s5 + $0x20] sm:$0xff]   ;;  %v3374_v39 = vld [vmem:[%s4595_s5 + $0x28] sm:$0xff]  }
  0x3f   :  { %v3372_v37 = vld [vmem:[%s4595_s5 + $0xc0] sm:$0xff]   ;;  %v3375_v40 = vld [vmem:[%s4595_s5 + $0xc8] sm:$0xff]   ;;  %v3376_v41 = vld [vmem:[%s4595_s5 + $0x70] sm:$0xff]  }
  0x40   :  { %v3377_v42 = vld [vmem:[%s4595_s5 + $0x30] sm:$0xff]   ;;  %v3379_v44 = vld [vmem:[%s4595_s5 + $0x78] sm:$0xff]  }
  0x41   :  { %189 = vmatpush1.bf16.msra.mxu0 %v3352_v15  ;;  %230 = vmatpush1.bf16.msra.mxu1 %v3353_v16  ;;  %v3378_v43 = vld [vmem:[%s4595_s5 + $0xd0] sm:$0xff]   ;;  %v3380_v45 = vld [vmem:[%s4595_s5 + $0x38] sm:$0xff]  }
  0x42   :  { %602 = vmatprep.subr.bf16.mxu1 %v3705_v2  ;;  %3167 = vmatprep.subr.bf16.mxu0 %v3358_v20  ;;  %v3381_v46 = vld [vmem:[%s4595_s5 + $0xd8] sm:$0xff]  }
  0x44   :  { %2936 = vmatmul.mubr.msk.bf16.vlgmr.msra.gmra.mrb[0].mxu0 %vm178_vm0, %v81_v19  ;;  %2937 = vmatmul.mubr.msk.bf16.vlgmr.msra.gmra.mrb[0].mxu1 %vm178_vm0, %v81_v19 }
  0x45   :  { %603 = vmatpush1.bf16.msra.mxu1 %v3354_v18  ;;  %3168 = vmatpush3.bf16.msra.mxu0 %v3359_v21 }
  0x46   :  { %604 = vmatprep.subr.bf16.mxu1 %v3705_v2  ;;  %3169 = vmatprep.subr.bf16.mxu0 %v3361_v22 }
  0x49   :  { %605 = vmatpush1.bf16.msra.mxu1 %v3355_v23  ;;  %3170 = vmatpush3.bf16.msra.mxu0 %v3362_v24 }
  0x4a   :  { %606 = vmatprep.subr.bf16.mxu1 %v3705_v2  ;;  %3171 = vmatprep.subr.bf16.mxu0 %v3364_v25 }
  0x4d   :  { %607 = vmatpush1.bf16.msra.mxu1 %v3356_v26  ;;  %3172 = vmatpush3.bf16.msra.mxu0 %v3365_v27 }
  0x4e   :  { %608 = vmatprep.subr.bf16.mxu1 %v3705_v2  ;;  %3173 = vmatprep.subr.bf16.mxu0 %v3367_v32 }
  0x51   :  { %609 = vmatpush1.bf16.msra.mxu1 %v3357_v28  ;;  %3174 = vmatpush3.bf16.msra.mxu0 %v3368_v33 }
  0x52   :  { %610 = vmatprep.subr.bf16.mxu1 %v3705_v2  ;;  %3175 = vmatprep.subr.bf16.mxu0 %v3370_v35 }
  0x55   :  { %611 = vmatpush1.bf16.msra.mxu1 %v3360_v29  ;;  %3176 = vmatpush3.bf16.msra.mxu0 %v3371_v36 }
  0x56   :  { %612 = vmatprep.subr.bf16.mxu1 %v3705_v2  ;;  %3177 = vmatprep.subr.bf16.mxu0 %v3373_v38 }
  0x59   :  { %613 = vmatpush1.bf16.msra.mxu1 %v3363_v30  ;;  %3178 = vmatpush3.bf16.msra.mxu0 %v3374_v39 }
  0x5a   :  { %614 = vmatprep.subr.bf16.mxu1 %v3705_v2  ;;  %3179 = vmatprep.subr.bf16.mxu0 %v3376_v41 }
  0x5d   :  { %615 = vmatpush1.bf16.msra.mxu1 %v3366_v31  ;;  %3180 = vmatpush3.bf16.msra.mxu0 %v3377_v42 }
  0x5e   :  { %616 = vmatprep.subr.bf16.mxu1 %v3705_v2  ;;  %3181 = vmatprep.subr.bf16.mxu0 %v3379_v44 }
  0x61   :  { %617 = vmatpush1.bf16.msra.mxu1 %v3369_v34  ;;  %3182 = vmatpush3.bf16.msra.mxu0 %v3380_v45 }
  0x62   :  { %618 = vmatprep.subr.bf16.mxu1 %v3705_v2 }
  0x65   :  { %619 = vmatpush1.bf16.msra.mxu1 %v3372_v37 }
  0x66   :  { %620 = vmatprep.subr.bf16.mxu1 %v3705_v2 }
  0x69   :  { %621 = vmatpush1.bf16.msra.mxu1 %v3375_v40 }
  0x6a   :  { %622 = vmatprep.subr.bf16.mxu1 %v3705_v2 }
  0x6d   :  { %623 = vmatpush1.bf16.msra.mxu1 %v3378_v43 }
  0x6e   :  { %624 = vmatprep.subr.bf16.mxu1 %v3705_v2 }
  0x71   :  { %625 = vmatpush1.bf16.msra.mxu1 %v3381_v46 }
 0x117   :  { %v3957_v47 = vpop.f32.mrb[0].mxu0  ;;  %v3959_v48 = vpop.f32.mrb[0].mxu1 }
 0x118   :  { %v265_v49 = vsel %vm264_vm1, %v3957_v47, 0.0  ;;  %v294_v50 = vmul.f32 %v3957_v47, %v3957_v47  ;;  %v279_v51 = vsel %vm264_vm1, %v3959_v48, 0.0  ;;  %v296_v52 = vmul.f32 %v3959_v48, %v3959_v48  ;;  %v3969_v53 = vpop.f32.mrb[1].mxu0  ;;  %v3971_v54 = vpop.f32.mrb[1].mxu1 }
 0x119   :  { %v266_v55 = vrot.slane %v265_v49, 4  ;;  %v280_v56 = vrot.slane %v279_v51, 4  ;;  %v272_v57 = vsel %vm264_vm1, %v3969_v53, 0.0  ;;  %v295_v58 = vmul.f32 %v3969_v53, %v3969_v53  ;;  %v220_v59 = vpop.f32.mrb[2].mxu0  ;;  %v261_v60 = vpop.f32.mrb[2].mxu1 }
 0x11a   :  { %v298_v61 = vsel %vm264_vm1, %v294_v50, 0.0  ;;  %v312_v62 = vsel %vm264_vm1, %v296_v52, 0.0  ;;  %v273_v63 = vrot.slane %v272_v57, 4  ;;  %v287_v0 = vsel %vm286_vm2, %v3971_v54, 0.0  ;;  %v221_v1 = vpop.f32.mrb[3].mxu0  ;;  %v262_v3 = vpop.f32.mrb[3].mxu1 }
 0x11b   :  { %v267_v4 = vadd.f32 %v266_v55, %v265_v49  ;;  %v299_v5 = vrot.slane %v298_v61, 4  ;;  %v281_v6 = vadd.f32 %v280_v56, %v279_v51  ;;  %v313_v7 = vrot.slane %v312_v62, 4  ;;  %v665_v1 = vld [vmem:[#allocation7 + $0x8] sm:$0xff] }
 0x11c   :  { %v274_v8 = vadd.f32 %v273_v63, %v272_v57  ;;  %v305_v9 = vsel %vm264_vm1, %v295_v58, 0.0  ;;  %v288_v10 = vrot.slane %v287_v0, 4  ;;  %v297_v11 = vmul.f32 %v3971_v54, %v3971_v54 }
 0x11d   :  { %v268_v12 = vrot.slane %v267_v4, 2  ;;  %v300_v13 = vadd.f32 %v299_v5, %v298_v61  ;;  %v282_v14 = vrot.slane %v281_v6, 2  ;;  %v314_v15 = vadd.f32 %v313_v7, %v312_v62 }
 0x11e   :  { %v275_v16 = vrot.slane %v274_v8, 2  ;;  %v306_v17 = vrot.slane %v305_v9, 4  ;;  %v289_v18 = vadd.f32 %v288_v10, %v287_v0  ;;  %v319_v19 = vsel %vm286_vm2, %v297_v11, 0.0  ;;  %v664_v0 = vld [vmem:[#allocation7] sm:$0xff] }
 0x11f   :  { %v269_v20 = vadd.f32 %v268_v12, %v267_v4  ;;  %v301_v21 = vrot.slane %v300_v13, 2  ;;  %v315_v22 = vrot.slane %v314_v15, 2  ;;  %v320_v26 = vrot.slane %v319_v19, 4 }
 0x120   :  { %v276_v23 = vadd.f32 %v275_v16, %v274_v8  ;;  %v307_v24 = vadd.f32 %v306_v17, %v305_v9  ;;  %v290_v25 = vrot.slane %v289_v18, 2  ;;  %v283_v28 = vadd.f32 %v282_v14, %v281_v6 }
 0x121   :  { %v302_v27 = vadd.f32 %v301_v21, %v300_v13  ;;  %v316_v29 = vadd.f32 %v315_v22, %v314_v15  ;;  %v321_v32 = vadd.f32 %v320_v26, %v319_v19  ;;  %v270_v33 = vrot.slane %v269_v20, 1 }
 0x122   :  { %v308_v30 = vrot.slane %v307_v24, 2  ;;  %v291_v31 = vadd.f32 %v290_v25, %v289_v18  ;;  %v277_v36 = vrot.slane %v276_v23, 1  ;;  %v284_v40 = vrot.slane %v283_v28, 1 }
 0x123   :  { %v303_v34 = vrot.slane %v302_v27, 1  ;;  %v317_v35 = vrot.slane %v316_v29, 1  ;;  %v322_v38 = vrot.slane %v321_v32, 2  ;;  %v271_v44 = vadd.f32 %v270_v33, %v269_v20 }
 0x124   :  { %v309_v37 = vadd.f32 %v308_v30, %v307_v24  ;;  %v292_v42 = vrot.slane %v291_v31, 1  ;;  %v278_v46 = vadd.f32 %v277_v36, %v276_v23  ;;  %v285_v51 = vadd.f32 %v284_v40, %v283_v28  ;;  %v4002_v28 = vld [vmem:[%s4597_s7] sm:$0x3f] }
 0x125   :  { %v304_v39 = vadd.f32 %v303_v34, %v302_v27  ;;  %v323_v43 = vadd.f32 %v322_v38, %v321_v32  ;;  %v318_v45 = vadd.f32 %v317_v35, %v316_v29  ;;  %v2968_v3 = vcombine.high %v664_v0, %v664_v0  ;;  %v3386_v36 = vld [vmem:[%s4593_s3] ss:$12 sps:$4 sm:$0xff]   ;;  %v3391_v38 = vld [vmem:[%s4593_s3 + $0x1c] ss:$12 sps:$4 sm:$0xff]  }
 0x126   :  { %v310_v41 = vrot.slane %v309_v37, 1  ;;  %v293_v55 = vadd.f32 %v292_v42, %v291_v31  ;;  %v2967_v4 = vcombine.low %v664_v0, %v664_v0  ;;  %v2970_v5 = vcombine.high %v665_v1, %v665_v1  ;;  %v3394_v40 = vld [vmem:[%s4593_s3 + $0x34] ss:$12 sps:$4 sm:$0xff]   ;;  %v3404_v0 = vld [vmem:[%s4593_s3 + $0x90] ss:$12 sps:$4 sm:$0xff]  }
 0x127   :  { %v324_v49 = vrot.slane %v323_v43, 1  ;;  %v327_v52 = vsel %vm326_vm3, %v271_v44, %v304_v39  ;;  %v329_v59 = vsel %vm326_vm3, %v285_v51, %v318_v45  ;;  %v2969_v6 = vcombine.low %v665_v1, %v665_v1  ;;  %2971 = vmatprep.subr.msk.bf16.mxu1 %vm680_vm4, %v2968_v3  ;;  %v3389_v39 = vld [vmem:[%s4593_s3 + $0x18] ss:$12 sps:$4 sm:$0xff]   ;;  %v3414_v42 = vld [vmem:[%s4593_s3 + $0x8] ss:$12 sps:$4 sm:$0xff]  }
 0x128   :  { %v311_v50 = vadd.f32 %v310_v41, %v309_v37  ;;  %v331_v61 = vpack.c.bf16 %v327_v52, %v327_v52  ;;  %v333_v63 = vpack.c.bf16 %v329_v59, %v329_v59  ;;  %v682_v7 = vsel %vm680_vm4, %v2967_v4, 0  ;;  %2973 = vmatprep.subr.msk.bf16.mxu0 %vm680_vm4, %v2970_v5  ;;  %v3388_v37 = vld [vmem:[%s4593_s3 + $0x4] ss:$12 sps:$4 sm:$0xff]   ;;  %v3413_v41 = vld [vmem:[%s4593_s3 + $0xc8] ss:$12 sps:$4 sm:$0xff]  }
 0x129   :  { %v325_v56 = vadd.f32 %v324_v49, %v323_v43  ;;  %v688_v8 = vsel %vm680_vm4, %v2969_v6, 0  ;;  %v642_v14 = vstv %s80_s30  ;;  %v3996_v24 = vstv %s2919_s12  ;;  %v3392_v43 = vld [vmem:[%s4593_s3 + $0x30] ss:$12 sps:$4 sm:$0xff]   ;;  %v3418_v44 = vld [vmem:[%s4593_s3 + $0xe0] ss:$12 sps:$4 sm:$0xff]  }
 0x12a   :  { %v328_v57 = vsel %vm326_vm3, %v278_v46, %v311_v50  ;;  %v3397_v45 = vld [vmem:[%s4593_s3 + $0x4c] ss:$12 sps:$4 sm:$0xff]   ;;  %v3395_v50 = vld [vmem:[%s4593_s3 + $0x48] ss:$12 sps:$4 sm:$0xff]   ;;  %v3400_v51 = vld [vmem:[%s4593_s3 + $0x64] ss:$12 sps:$4 sm:$0xff]  }
 0x12b   :  { %v332_v58 = vpack.c.bf16 %v328_v57, %v328_v57  ;;  %v330_v60 = vsel %vm326_vm3, %v293_v55, %v325_v56  ;;  %v3419_v46 = vld [vmem:[%s4593_s3 + $0x20] ss:$12 sps:$4 sm:$0xff]   ;;  %v3423_v49 = vld [vmem:[%s4593_s3 + $0xf8] ss:$12 sps:$4 sm:$0xff]   ;;  %v3428_v55 = vld [vmem:[%s4593_s3 + $0x110] ss:$12 sps:$4 sm:$0xff]  }
 0x12c   :  { %v334_v62 = vpack.c.bf16 %v330_v60, %v330_v60  ;;  %v3424_v52 = vld [vmem:[%s4593_s3 + $0x38] ss:$12 sps:$4 sm:$0xff]   ;;  %v3398_v56 = vld [vmem:[%s4593_s3 + $0x60] ss:$12 sps:$4 sm:$0xff]   ;;  %v3403_v57 = vld [vmem:[%s4593_s3 + $0x7c] ss:$12 sps:$4 sm:$0xff]  }
 0x12d   :  { %594 = vmatprep.mubr.bf16.mxu0 %v332_v58  ;;  %v3429_v58 = vld [vmem:[%s4593_s3 + $0x50] ss:$12 sps:$4 sm:$0xff]   ;;  %v3433_v59 = vld [vmem:[%s4593_s3 + $0x128] ss:$12 sps:$4 sm:$0xff]   ;;  %v3401_v60 = vld [vmem:[%s4593_s3 + $0x78] ss:$12 sps:$4 sm:$0xff]  }
 0x12e   :  { %595 = vmatmul.mubr.bf16.vlgmr.msra.gmra.mrb[4].mxu0 %v331_v61  ;;  %2966 = vmatprep.mubr.msk.bf16.mxu1 %vm178_vm0, %v334_v62  ;;  %v3406_v61 = vld [vmem:[%s4593_s3 + $0x94] ss:$12 sps:$4 sm:$0xff]   ;;  %v3409_v1 = vld [vmem:[%s4593_s3 + $0xac] ss:$12 sps:$4 sm:$0xff]   ;;  %v3412_v4 = vld [vmem:[%s4593_s3 + $0xc4] ss:$12 sps:$4 sm:$0xff]  }
 0x12f   :  { %766 = vmatprep.mubr.bf16.mxu0 %v3705_v2  ;;  %635 = vmatmul.mubr.bf16.vlgmr.msra.gmra.mrb[4].mxu1 %v333_v63  ;;  %v3434_v62 = vld [vmem:[%s4593_s3 + $0x68] ss:$12 sps:$4 sm:$0xff]   ;;  %v3438_v63 = vld [vmem:[%s4593_s3 + $0x140] ss:$12 sps:$4 sm:$0xff]  }
 0x130   :  { %725 = vmatprep.mubr.bf16.mxu1 %v3705_v2  ;;  %694 = vmatpush1.bf16.msra.mxu1 %v682_v7  ;;  %v3407_v3 = vld [vmem:[%s4593_s3 + $0xa8] ss:$12 sps:$4 sm:$0xff]   ;;  %v3410_v5 = vld [vmem:[%s4593_s3 + $0xc0] ss:$12 sps:$4 sm:$0xff]   ;;  %v3415_v7 = vld [vmem:[%s4593_s3 + $0xd8] ss:$12 sps:$4 sm:$0xff]  }
 0x131   :  { %735 = vmatpush1.bf16.msra.mxu0 %v688_v8  ;;  %3189 = vmatprep.subr.bf16.mxu1 %v3413_v41  ;;  %v3417_v6 = vld [vmem:[%s4593_s3 + $0xdc] ss:$12 sps:$4 sm:$0xff]   ;;  %v3422_v8 = vld [vmem:[%s4593_s3 + $0xf4] ss:$12 sps:$4 sm:$0xff]  }
 0x132   :  { %1372 = vmatprep.subr.bf16.mxu0 %v3388_v37 }
 0x201   :  { %v3183_v9 = vpop.f32.mrb[4].mxu0 }
 0x202   :  { %v3184_v10 = vpop.f32.mrb[5].mxu0  ;;  %v636_v11 = vpop.f32.mrb[4].mxu1 }
 0x203   :  { %v3185_v12 = vadd.f32 %v3184_v10, %v3183_v9  ;;  %v3186_v13 = vpop.f32.mrb[6].mxu0  ;;  %v638_v15 = vpop.f32.mrb[5].mxu1  ;;  %v3420_v9 = vld [vmem:[%s4593_s3 + $0xf0] ss:$12 sps:$4 sm:$0xff]   ;;  %v3427_v10 = vld [vmem:[%s4593_s3 + $0x10c] ss:$12 sps:$4 sm:$0xff]  }
 0x204   :  { %v3187_v16 = vpop.f32.mrb[7].mxu0  ;;  %v639_v18 = vpop.f32.mrb[6].mxu1  ;;  %v3430_v13 = vld [vmem:[%s4593_s3 + $0x120] ss:$12 sps:$4 sm:$0xff]   ;;  %v3435_v15 = vld [vmem:[%s4593_s3 + $0x138] ss:$12 sps:$4 sm:$0xff]  }
 0x205   :  { %v637_v17 = vadd.f32 %v3185_v12, %v636_v11  ;;  %v640_v19 = vpop.f32.mrb[7].mxu1  ;;  %v3425_v11 = vld [vmem:[%s4593_s3 + $0x108] ss:$12 sps:$4 sm:$0xff]   ;;  %v3432_v12 = vld [vmem:[%s4593_s3 + $0x124] ss:$12 sps:$4 sm:$0xff]   ;;  %v775_v16 = vlaneseq }
 0x206   :  { %v3439_v18 = vld [vmem:[%s4593_s3 + $0x80] ss:$12 sps:$4 sm:$0xff]  }
 0x207   :  { %v643_v20 = vmul.f32 %v642_v14, %v637_v17  ;;  %v3437_v14 = vld [vmem:[%s4593_s3 + $0x13c] ss:$12 sps:$4 sm:$0xff]   ;;  %v776_v17 = vshrl.u32 %v775_v16, 7  ;;  %v3460_v16 = vld [vmem:[%s4593_s3 + $0x1b4] ss:$12 sps:$4 sm:$0xff]  }
 0x209   :  { %v644_v21 = vmul.f32 %v643_v20, %v643_v20  ;;  %v4129_v19 = vsub.s32 0, %v776_v17 }
 0x20b   :  { %v646_v22 = vrot.slane %v644_v21, 7  ;;  %v3442_v21 = vld [vmem:[%s4593_s3 + $0x154] ss:$12 sps:$4 sm:$0xff]  }
 0x20d   :  { %v648_v23 = vsub.f32 %v643_v20, %v646_v22  ;;  %v3443_v22 = vld [vmem:[%s4593_s3 + $0x158] ss:$12 sps:$4 sm:$0xff]  }
 0x20f   :  { %v649_v25 = vmax.f32 %v648_v23, 0.0 }
 0x211   :  { %v651_v26 = vadd.f32 %v3996_v24, %v649_v25 }
 0x213   :  { %3609 = vrsqrt.f32 %v651_v26  ;;  %v3440_v26 = vld [vmem:[%s4593_s3 + $0x150] ss:$12 sps:$4 sm:$0xff]  }
 0x21d   :  { %v3610_v27 = vpop.eup %3609 }
 0x21e   :  { %v654_v29 = vrot.slane %v3610_v27, 1  ;;  %v3444_v27 = vld [vmem:[%s4593_s3 + $0x98] ss:$12 sps:$4 sm:$0xff]  }
 0x220   :  { %v656_v30 = vmul.f32 %v654_v29, %v4002_v28 }
 0x222   :  { %v657_v31 = vmul.f32 %v656_v30, %v643_v20  ;;  %v4131_v20 = vsub.s32 1, %v776_v17  ;;  %v3458_v17 = vld [vmem:[%s4593_s3 + $0x1b0] ss:$12 sps:$4 sm:$0xff]  }
 0x224   :  { %v659_v32 = vrot.slane %v657_v31, 7 }
 0x226   :  { %v661_v33 = vsub.f32 %v4002_v28, %v659_v32 }
 0x228   :  { %v662_v34 = vsel %vm326_vm3, %v656_v30, %v661_v33 }
 0x229   :  { %v663_v35 = vpack.c.bf16 %v662_v34, %v662_v34 }
 0x22b   :  { %2972 = vmatmul.mubr.msk.bf16.vlgmr.msra.gmra.mrb[8].mxu1 %vm676_vm5, %v663_v35  ;;  %2974 = vmatmul.mubr.msk.bf16.vlgmr.msra.gmra.mrb[8].mxu0 %vm676_vm5, %v663_v35 }
 0x22c   :  { %1373 = vmatpush1.bf16.msra.mxu0 %v3386_v36  ;;  %3190 = vmatpush3.bf16.msra.mxu1 %v3414_v42 }
 0x22d   :  { %1374 = vmatprep.subr.bf16.mxu0 %v3391_v38  ;;  %3191 = vmatprep.subr.bf16.mxu1 %v3418_v44  ;;  %v3448_v44 = vld [vmem:[%s4593_s3 + $0x170] ss:$12 sps:$4 sm:$0xff]  }
 0x230   :  { %1375 = vmatpush1.bf16.msra.mxu0 %v3389_v39  ;;  %3192 = vmatpush3.bf16.msra.mxu1 %v3419_v46 }
 0x231   :  { %1376 = vmatprep.subr.bf16.mxu0 %v3394_v40  ;;  %3193 = vmatprep.subr.bf16.mxu1 %v3423_v49  ;;  %v3445_v49 = vld [vmem:[%s4593_s3 + $0x168] ss:$12 sps:$4 sm:$0xff]  }
 0x234   :  { %1377 = vmatpush1.bf16.msra.mxu0 %v3392_v43  ;;  %3194 = vmatpush3.bf16.msra.mxu1 %v3424_v52  ;;  %v3447_v43 = vld [vmem:[%s4593_s3 + $0x16c] ss:$12 sps:$4 sm:$0xff]  }
 0x235   :  { %1378 = vmatprep.subr.bf16.mxu0 %v3397_v45  ;;  %3195 = vmatprep.subr.bf16.mxu1 %v3428_v55 }
 0x238   :  { %1379 = vmatpush1.bf16.msra.mxu0 %v3395_v50  ;;  %3196 = vmatpush3.bf16.msra.mxu1 %v3429_v58  ;;  %v3449_v50 = vld [vmem:[%s4593_s3 + $0xb0] ss:$12 sps:$4 sm:$0xff]  }
 0x239   :  { %1380 = vmatprep.subr.bf16.mxu0 %v3400_v51  ;;  %3197 = vmatprep.subr.bf16.mxu1 %v3433_v59 }
 0x23c   :  { %1381 = vmatpush1.bf16.msra.mxu0 %v3398_v56  ;;  %3198 = vmatpush3.bf16.msra.mxu1 %v3434_v62 }
 0x23d   :  { %1382 = vmatprep.subr.bf16.mxu0 %v3403_v57  ;;  %3199 = vmatprep.subr.bf16.mxu1 %v3438_v63 }
 0x240   :  { %1383 = vmatpush1.bf16.msra.mxu0 %v3401_v60  ;;  %3200 = vmatpush3.bf16.msra.mxu1 %v3439_v18  ;;  %v3461_v18 = vld [vmem:[%s4593_s3 + $0x1b8] ss:$12 sps:$4 sm:$0xff]  }
 0x241   :  { %1384 = vmatprep.subr.bf16.mxu0 %v3406_v61  ;;  %3201 = vmatprep.subr.bf16.mxu1 %v3443_v22  ;;  %v3462_v22 = vld [vmem:[%s4593_s3 + $0x1c8] ss:$12 sps:$4 sm:$0xff]  }
 0x244   :  { %1385 = vmatpush1.bf16.msra.mxu0 %v3404_v0  ;;  %3202 = vmatpush3.bf16.msra.mxu1 %v3444_v27  ;;  %v3469_v27 = vld [vmem:[%s4593_s3 + $0x1e8] ss:$12 sps:$4 sm:$0xff]  }
 0x245   :  { %1386 = vmatprep.subr.bf16.mxu0 %v3409_v1  ;;  %3203 = vmatprep.subr.bf16.mxu1 %v3448_v44  ;;  %v3489_v44 = vld [vmem:[%s4593_s3 + $0x260] ss:$12 sps:$4 sm:$0xff]  }
 0x248   :  { %1387 = vmatpush1.bf16.msra.mxu0 %v3407_v3  ;;  %3204 = vmatpush3.bf16.msra.mxu1 %v3449_v50  ;;  %v3707_v50 = vmov 0.0  }
 0x249   :  { %1388 = vmatprep.subr.bf16.mxu0 %v3412_v4  ;;  %1494 = vmatprep.subr.bf16.mxu1 %v3705_v2 }
 0x24c   :  { %1389 = vmatpush1.bf16.msra.mxu0 %v3410_v5 }
 0x24d   :  { %1390 = vmatprep.subr.bf16.mxu0 %v3417_v6 }
 0x250   :  { %1391 = vmatpush1.bf16.msra.mxu0 %v3415_v7 }
 0x251   :  { %1392 = vmatprep.subr.bf16.mxu0 %v3422_v8 }
 0x254   :  { %1393 = vmatpush1.bf16.msra.mxu0 %v3420_v9  ;;  %v3450_v9 = vld [vmem:[%s4593_s3 + $0x180] ss:$12 sps:$4 sm:$0xff]  }
 0x255   :  { %1394 = vmatprep.subr.bf16.mxu0 %v3427_v10  ;;  %v3453_v10 = vld [vmem:[%s4593_s3 + $0x188] ss:$12 sps:$4 sm:$0xff]  }
 0x258   :  { %1395 = vmatpush1.bf16.msra.mxu0 %v3425_v11 }
 0x259   :  { %1396 = vmatprep.subr.bf16.mxu0 %v3432_v12  ;;  %v3456_v12 = vld [vmem:[%s4593_s3 + $0x19c] ss:$12 sps:$4 sm:$0xff]  }
 0x25c   :  { %1397 = vmatpush1.bf16.msra.mxu0 %v3430_v13 }
 0x25d   :  { %1398 = vmatprep.subr.bf16.mxu0 %v3437_v14  ;;  %v3454_v14 = vld [vmem:[%s4593_s3 + $0x198] ss:$12 sps:$4 sm:$0xff]  }
 0x260   :  { %1399 = vmatpush1.bf16.msra.mxu0 %v3435_v15  ;;  %v3457_v15 = vld [vmem:[%s4593_s3 + $0x1a0] ss:$12 sps:$4 sm:$0xff]  }
 0x261   :  { %1400 = vmatprep.subr.bf16.mxu0 %v3442_v21  ;;  %v3464_v21 = vld [vmem:[%s4593_s3 + $0x1cc] ss:$12 sps:$4 sm:$0xff]  }
 0x264   :  { %1401 = vmatpush1.bf16.msra.mxu0 %v3440_v26  ;;  %v3466_v26 = vld [vmem:[%s4593_s3 + $0x1e0] ss:$12 sps:$4 sm:$0xff]  }
 0x265   :  { %1402 = vmatprep.subr.bf16.mxu0 %v3447_v43  ;;  %v3486_v43 = vld [vmem:[%s4593_s3 + $0x258] ss:$12 sps:$4 sm:$0xff]  }
 0x268   :  { %1403 = vmatpush1.bf16.msra.mxu0 %v3445_v49  ;;  %v3492_v49 = vld [vmem:[%s4595_s5 + $0x148] sm:$0xff]  }
 0x2fe   :  { %v727_v23 = vpop.f32.mrb[8].mxu1  ;;  %v768_v25 = vpop.f32.mrb[8].mxu0 }
 0x2ff   :  { %v778_v29 = vrot.slane %v727_v23, %v4129_v19  ;;  %v786_v30 = vrot.slane %v768_v25, %v4129_v19  ;;  %v729_v31 = vpop.f32.mrb[9].mxu1  ;;  %v770_v32 = vpop.f32.mrb[9].mxu0  ;;  %v798_v33 = vrot.slane %v727_v23, %v4131_v20  ;;  %v806_v40 = vrot.slane %v768_v25, %v4131_v20  ;;  %v3465_v23 = vld [vmem:[%s4593_s3 + $0x1d0] ss:$12 sps:$4 sm:$0xff]  }
 0x300   :  { %v782_v34 = vrot.slane %v729_v31, %v4129_v19  ;;  %v790_v35 = vrot.slane %v770_v32, %v4129_v19  ;;  %v731_v36 = vpop.f32.mrb[10].mxu1  ;;  %v772_v37 = vpop.f32.mrb[10].mxu0  ;;  %v810_v46 = vrot.slane %v770_v32, %v4131_v20  ;;  %v3468_v25 = vld [vmem:[%s4593_s3 + $0x1e4] ss:$12 sps:$4 sm:$0xff]   ;;  %v3476_v32 = vld [vmem:[%s4593_s3 + $0x214] ss:$12 sps:$4 sm:$0xff]  }
 0x301   :  { %v791_v38 = vmul.f32 %v778_v29, %v3957_v47  ;;  %v793_v39 = vmul.f32 %v786_v30, %v3959_v48  ;;  %v732_v41 = vpop.f32.mrb[11].mxu1  ;;  %v773_v42 = vpop.f32.mrb[11].mxu0  ;;  %v802_v47 = vrot.slane %v729_v31, %v4131_v20  ;;  %v3472_v29 = vld [vmem:[%s4593_s3 + $0x1fc] ss:$12 sps:$4 sm:$0xff]   ;;  %v3470_v30 = vld [vmem:[%s4593_s3 + $0x1f8] ss:$12 sps:$4 sm:$0xff]  }
 0x302   :  { %v792_v45 = vmul.f32 %v782_v34, %v3969_v53  ;;  %v794_v48 = vmul.f32 %v790_v35, %v3971_v54  ;;  %v3452_v54 = vld [vmem:[%s4593_s3 + $0x184] ss:$12 sps:$4 sm:$0xff]   ;;  %v3473_v31 = vld [vmem:[%s4593_s3 + $0x200] ss:$12 sps:$4 sm:$0xff]   ;;  %v3478_v36 = vld [vmem:[%s4593_s3 + $0x228] ss:$12 sps:$4 sm:$0xff]  }
 0x303   :  { %v811_v51 = vadd.f32 %v798_v33, %v791_v38  ;;  %v4169_v52 = vadd.f32 %v806_v40, %v793_v39  ;;  %1413 = vmatprep.subr.bf16.mxu0 %v3452_v54  ;;  %v3474_v33 = vld [vmem:[%s4593_s3 + $0x210] ss:$12 sps:$4 sm:$0xff]   ;;  %v3477_v34 = vld [vmem:[%s4593_s3 + $0x218] ss:$12 sps:$4 sm:$0xff]   ;;  %v3482_v39 = vld [vmem:[%s4593_s3 + $0x240] ss:$12 sps:$4 sm:$0xff]  }
 0x304   :  { %v812_v53 = vadd.f32 %v802_v47, %v792_v45  ;;  %v814_v55 = vadd.f32 %v810_v46, %v794_v48  ;;  %v3480_v35 = vld [vmem:[%s4593_s3 + $0x22c] ss:$12 sps:$4 sm:$0xff]   ;;  %v3481_v37 = vld [vmem:[%s4593_s3 + $0x230] ss:$12 sps:$4 sm:$0xff]   ;;  %v3485_v40 = vld [vmem:[%s4593_s3 + $0x248] ss:$12 sps:$4 sm:$0xff]  }
 0x305   :  { %v817_v56 = vmax.f32 %v4169_v52, 0.0  ;;  %v815_v60 = vmax.f32 %v811_v51, 0.0  ;;  %v3484_v38 = vld [vmem:[%s4593_s3 + $0x244] ss:$12 sps:$4 sm:$0xff]   ;;  %v3488_v41 = vld [vmem:[%s4593_s3 + $0x25c] ss:$12 sps:$4 sm:$0xff]  }
 0x306   :  { %v818_v57 = vmax.f32 %v814_v55, 0.0  ;;  %v816_v58 = vmax.f32 %v812_v53, 0.0  ;;  %v3490_v48 = vld [vmem:[%s4595_s5 + $0x140] sm:$0xff]   ;;  %v3493_v52 = vld [vmem:[%s4595_s5 + $0x108] sm:$0xff]   ;;  %v3494_v53 = vld [vmem:[%s4595_s5 + $0x150] sm:$0xff]  }
 0x307   :  { %v3491_v46 = vld [vmem:[%s4595_s5 + $0x100] sm:$0xff]   ;;  %v3495_v55 = vld [vmem:[%s4595_s5 + $0x110] sm:$0xff]   ;;  %v3497_v54 = vld [vmem:[%s4595_s5 + $0x158] sm:$0xff]  }
 0x308   :  { %829 = vrot.lane.b32.xlu1 %v818_v57, %s3706_s15  ;;  %v3315_v59 = vpack.i.bf16 %v817_v56, %v816_v58  ;;  %v3496_v51 = vld [vmem:[%s4595_s5 + $0x180] sm:$0xff]  }
 0x30a   :  { %3316 = vrot.lane.b32.xlu0 %v3315_v59, %s3706_s15  ;;  %v3501_v59 = vld [vmem:[%s4595_s5 + $0x120] sm:$0xff]  }
 0x30e   :  { %823 = vrot.lane.b32.xlu0 %v815_v60, %s3706_s15 }
 0x37a   :  { %v4185_v0 = vpop.permute.xlu1 %829 }
 0x37b   :  { %v842_v6 = vmax.f32 %v818_v57, %v4185_v0  ;;  %v3499_v57 = vld [vmem:[%s4595_s5 + $0x188] sm:$0xff]  }
 0x37c   :  { %v4181_v61 = vpop.permute.xlu0 %3316 }
 0x37d   :  { %v3319_v62 = vunpack.i.h.bf16 %v4181_v61  ;;  %v3318_v63 = vunpack.i.l.bf16 %v4181_v61  ;;  %v847_v13 = vpack.c.bf16 %v842_v6, %v842_v6  ;;  %v3503_v61 = vld [vmem:[%s4595_s5 + $0x168] sm:$0xff]  }
 0x37e   :  { %v3511_v6 = vld [vmem:[%s4595_s5 + $0x1a8] sm:$0xff]  }
 0x37f   :  { %v833_v1 = vsel %vm831_vm6, %v3318_v63, %v3319_v62  ;;  %v834_v42 = vsel %vm831_vm6, %v3319_v62, %v4185_v0  ;;  %v3504_v62 = vld [vmem:[%s4595_s5 + $0x128] sm:$0xff]   ;;  %v3506_v0 = vld [vmem:[%s4595_s5 + $0x170] sm:$0xff]  }
 0x380   :  { %v824_v3 = vpop.permute.xlu0 %823  ;;  %v840_v4 = vmax.f32 %v816_v58, %v833_v1  ;;  %v841_v45 = vmax.f32 %v817_v56, %v834_v42  ;;  %v3498_v56 = vld [vmem:[%s4595_s5 + $0x118] sm:$0xff]   ;;  %v3500_v58 = vld [vmem:[%s4595_s5 + $0x160] sm:$0xff]   ;;  %v3507_v1 = vld [vmem:[%s4595_s5 + $0x130] sm:$0xff]  }
 0x381   :  { %v832_v5 = vsel %vm831_vm6, %v824_v3, %v3318_v63  ;;  %v3505_v63 = vld [vmem:[%s4595_s5 + $0x198] sm:$0xff]   ;;  %v3508_v3 = vld [vmem:[%s4595_s5 + $0x1a0] sm:$0xff]  }
 0x382   :  { %v839_v7 = vmax.f32 %v815_v60, %v832_v5  ;;  %v845_v8 = vpack.c.bf16 %v840_v4, %v840_v4  ;;  %v846_v47 = vpack.c.bf16 %v841_v45, %v841_v45  ;;  %v3502_v60 = vld [vmem:[%s4595_s5 + $0x190] sm:$0xff]   ;;  %v3509_v4 = vld [vmem:[%s4595_s5 + $0x178] sm:$0xff]  }
 0x383   :  { %v3510_v5 = vld [vmem:[%s4595_s5 + $0x138] sm:$0xff]  }
 0x384   :  { %v844_v11 = vpack.c.bf16 %v839_v7, %v839_v7  ;;  %1404 = vmatprep.mubr.bf16.mxu0 %v845_v8  ;;  %1486 = vmatprep.mubr.bf16.mxu1 %v845_v8 }
 0x386   :  { %1405 = vmatmul.mubr.bf16.vlgmr.msra.gmra.mrb[12].mxu0 %v844_v11  ;;  %1487 = vmatmul.mubr.bf16.vlgmr.msra.gmra.mrb[12].mxu1 %v844_v11 }
 0x387   :  { %1414 = vmatpush1.bf16.msra.mxu0 %v3450_v9  ;;  %1495 = vmatpush1.bf16.msra.mxu1 %v3453_v10 }
 0x388   :  { %3054 = vmatprep.mubr.msk.bf16.mxu0 %vm1368_vm7, %v847_v13  ;;  %3055 = vmatprep.mubr.msk.bf16.mxu1 %vm1368_vm7, %v847_v13 }
 0x389   :  { %1415 = vmatprep.subr.bf16.mxu0 %v3456_v12  ;;  %1496 = vmatprep.subr.bf16.mxu1 %v3705_v2 }
 0x38b   :  { %1416 = vmatpush1.bf16.msra.mxu0 %v3454_v14  ;;  %1497 = vmatpush1.bf16.msra.mxu1 %v3457_v15 }
 0x38c   :  { %1417 = vmatprep.subr.bf16.mxu0 %v3460_v16  ;;  %1498 = vmatprep.subr.bf16.mxu1 %v3705_v2 }
 0x38f   :  { %1418 = vmatpush1.bf16.msra.mxu0 %v3458_v17  ;;  %1499 = vmatpush1.bf16.msra.mxu1 %v3461_v18 }
 0x390   :  { %1419 = vmatprep.subr.bf16.mxu0 %v3464_v21  ;;  %1500 = vmatprep.subr.bf16.mxu1 %v3705_v2 }
 0x393   :  { %1420 = vmatpush1.bf16.msra.mxu0 %v3462_v22  ;;  %1501 = vmatpush1.bf16.msra.mxu1 %v3465_v23 }
 0x394   :  { %1421 = vmatprep.subr.bf16.mxu0 %v3468_v25  ;;  %1502 = vmatprep.subr.bf16.mxu1 %v3705_v2 }
 0x397   :  { %1422 = vmatpush1.bf16.msra.mxu0 %v3466_v26  ;;  %1503 = vmatpush1.bf16.msra.mxu1 %v3469_v27 }
 0x398   :  { %1423 = vmatprep.subr.bf16.mxu0 %v3472_v29  ;;  %1504 = vmatprep.subr.bf16.mxu1 %v3705_v2 }
 0x39b   :  { %1424 = vmatpush1.bf16.msra.mxu0 %v3470_v30  ;;  %1505 = vmatpush1.bf16.msra.mxu1 %v3473_v31 }
 0x39c   :  { %1425 = vmatprep.subr.bf16.mxu0 %v3476_v32  ;;  %1506 = vmatprep.subr.bf16.mxu1 %v3705_v2 }
 0x39f   :  { %1426 = vmatpush1.bf16.msra.mxu0 %v3474_v33  ;;  %1507 = vmatpush1.bf16.msra.mxu1 %v3477_v34 }
 0x3a0   :  { %1427 = vmatprep.subr.bf16.mxu0 %v3480_v35  ;;  %1508 = vmatprep.subr.bf16.mxu1 %v3705_v2 }
 0x3a3   :  { %1428 = vmatpush1.bf16.msra.mxu0 %v3478_v36  ;;  %1509 = vmatpush1.bf16.msra.mxu1 %v3481_v37 }
 0x3a4   :  { %1429 = vmatprep.subr.bf16.mxu0 %v3484_v38  ;;  %1510 = vmatprep.subr.bf16.mxu1 %v3705_v2 }
 0x3a7   :  { %1430 = vmatpush1.bf16.msra.mxu0 %v3482_v39  ;;  %1511 = vmatpush1.bf16.msra.mxu1 %v3485_v40 }
 0x3a8   :  { %1431 = vmatprep.subr.bf16.mxu0 %v3488_v41  ;;  %1512 = vmatprep.subr.bf16.mxu1 %v3705_v2 }
 0x3ab   :  { %1432 = vmatpush1.bf16.msra.mxu0 %v3486_v43  ;;  %1513 = vmatpush1.bf16.msra.mxu1 %v3489_v44 }
 0x3ac   :  { %3267 = vmatprep.subr.bf16.mxu0 %v3707_v50  ;;  %3211 = vmatprep.subr.bf16.mxu1 %v3490_v48 }
 0x3ae   :  { %1446 = vmatmul.mubr.bf16.vlgmr.msra.gmra.mrb[12].mxu0 %v846_v47  ;;  %1527 = vmatmul.mubr.bf16.vlgmr.msra.gmra.mrb[16].mxu1 %v846_v47 }
 0x3af   :  { %3212 = vmatpush3.bf16.msra.mxu1 %v3491_v46  ;;  %3268 = vmatpush3.bf16.msra.mxu0 %v3496_v51 }
 0x3b0   :  { %3213 = vmatprep.subr.bf16.mxu1 %v3492_v49  ;;  %3269 = vmatprep.subr.bf16.mxu0 %v3707_v50 }
 0x3b1   :  { %3279 = vmatprep.mubr.msk.bf16.mxu0 %vm3708_vm8, %v3707_v50 }
 0x3b3   :  { %3214 = vmatpush3.bf16.msra.mxu1 %v3493_v52  ;;  %3270 = vmatpush3.bf16.msra.mxu0 %v3499_v57 }
 0x3b4   :  { %3215 = vmatprep.subr.bf16.mxu1 %v3494_v53  ;;  %3271 = vmatprep.subr.bf16.mxu0 %v3707_v50 }
 0x3b7   :  { %3216 = vmatpush3.bf16.msra.mxu1 %v3495_v55  ;;  %3272 = vmatpush3.bf16.msra.mxu0 %v3502_v60 }
 0x3b8   :  { %3217 = vmatprep.subr.bf16.mxu1 %v3497_v54  ;;  %3273 = vmatprep.subr.bf16.mxu0 %v3707_v50 }
 0x3bb   :  { %3218 = vmatpush3.bf16.msra.mxu1 %v3498_v56  ;;  %3274 = vmatpush3.bf16.msra.mxu0 %v3505_v63 }
 0x3bc   :  { %3219 = vmatprep.subr.bf16.mxu1 %v3500_v58  ;;  %3275 = vmatprep.subr.bf16.mxu0 %v3707_v50 }
 0x3bf   :  { %3220 = vmatpush3.bf16.msra.mxu1 %v3501_v59  ;;  %3276 = vmatpush3.bf16.msra.mxu0 %v3508_v3 }
 0x3c0   :  { %3221 = vmatprep.subr.bf16.mxu1 %v3503_v61  ;;  %3277 = vmatprep.subr.bf16.mxu0 %v3707_v50 }
 0x3c3   :  { %3222 = vmatpush3.bf16.msra.mxu1 %v3504_v62  ;;  %3278 = vmatpush3.bf16.msra.mxu0 %v3511_v6 }
 0x3c4   :  { %3223 = vmatprep.subr.bf16.mxu1 %v3506_v0 }
 0x3c7   :  { %3224 = vmatpush3.bf16.msra.mxu1 %v3507_v1 }
 0x3c8   :  { %3225 = vmatprep.subr.bf16.mxu1 %v3509_v4 }
 0x3cb   :  { %3226 = vmatpush3.bf16.msra.mxu1 %v3510_v5 }
 0x459   :  { %v3205_v7 = vpop.f32.mrb[12].mxu1 }
 0x45a   :  { %v3206_v8 = vpop.f32.mrb[13].mxu1 }
 0x45b   :  { %v3207_v9 = vadd.f32 %v3206_v8, %v3205_v7  ;;  %v3208_v10 = vpop.f32.mrb[14].mxu1 }
 0x45c   :  { %v3209_v11 = vpop.f32.mrb[15].mxu1 }
 0x481   :  { %v4370_v12 = vpop.f32.mrb[12].mxu0  ;;  %v1528_v13 = vpop.f32.mrb[16].mxu1 }
 0x482   :  { %v1534_v14 = vsel %vm264_vm1, %v4370_v12, 0.0  ;;  %v1556_v15 = vmul.f32 %v4370_v12, %v4370_v12  ;;  %v4376_v16 = vadd.f32 %v3207_v9, %v1528_v13  ;;  %v4378_v17 = vpop.f32.mrb[13].mxu0  ;;  %v1530_v18 = vpop.f32.mrb[17].mxu1 }
 0x483   :  { %v1535_v21 = vrot.slane %v1534_v14, 4  ;;  %v1541_v22 = vsel %vm264_vm1, %v4378_v17, 0.0  ;;  %v1557_v23 = vmul.f32 %v4378_v17, %v4378_v17  ;;  %v1451_v25 = vpop.f32.mrb[14].mxu0  ;;  %v1531_v26 = vpop.f32.mrb[18].mxu1 }
 0x484   :  { %v1559_v27 = vsel %vm264_vm1, %v1556_v15, 0.0  ;;  %v1549_v29 = vsel %vm1548_vm9, %v4376_v16, 0.0  ;;  %v1558_v30 = vmul.f32 %v4376_v16, %v4376_v16  ;;  %v1542_v31 = vrot.slane %v1541_v22, 4  ;;  %v1452_v32 = vpop.f32.mrb[15].mxu0  ;;  %v1532_v33 = vpop.f32.mrb[19].mxu1  ;;  %v1872_v15 = vld [vmem:[#allocation7 + $0x10] sm:$0xff] }
 0x485   :  { %v1536_v34 = vadd.f32 %v1535_v21, %v1534_v14  ;;  %v1560_v35 = vrot.slane %v1559_v27, 4  ;;  %v1550_v36 = vrot.slane %v1549_v29, 4  ;;  %v1566_v37 = vsel %vm264_vm1, %v1557_v23, 0.0 }
 0x486   :  { %v1573_v38 = vsel %vm1548_vm9, %v1558_v30, 0.0  ;;  %v1543_v39 = vadd.f32 %v1542_v31, %v1541_v22  ;;  %v1567_v40 = vrot.slane %v1566_v37, 4  ;;  %v3080_v18 = vcombine.high %v1872_v15, %v1872_v15 }
 0x487   :  { %v1537_v41 = vrot.slane %v1536_v34, 2  ;;  %v1561_v42 = vadd.f32 %v1560_v35, %v1559_v27  ;;  %v1551_v43 = vadd.f32 %v1550_v36, %v1549_v29  ;;  %v1574_v44 = vrot.slane %v1573_v38, 4 }
 0x488   :  { %v1544_v45 = vrot.slane %v1543_v39, 2  ;;  %v1568_v47 = vadd.f32 %v1567_v40, %v1566_v37  ;;  %v3079_v21 = vcombine.low %v1872_v15, %v1872_v15  ;;  %3082 = vmatprep.subr.msk.bf16.mxu1 %vm680_vm4, %v3080_v18  ;;  %v1845_v32 = vstv %s2975_s22  ;;  %v3548_v15 = vld [vmem:[#allocation6 + $0xb0] ss:$8 sps:$4 sm:$0xff]   ;;  %v3551_v18 = vld [vmem:[#allocation6 + $0xc0] ss:$8 sps:$4 sm:$0xff]  }
 0x489   :  { %v1538_v48 = vadd.f32 %v1537_v41, %v1536_v34  ;;  %v1562_v46 = vrot.slane %v1561_v42, 2  ;;  %v1552_v49 = vrot.slane %v1551_v43, 2  ;;  %v1575_v51 = vadd.f32 %v1574_v44, %v1573_v38 }
 0x48a   :  { %v1545_v52 = vadd.f32 %v1544_v45, %v1543_v39  ;;  %v1569_v53 = vrot.slane %v1568_v47, 2  ;;  %v1886_v22 = vsel %vm680_vm4, %v3079_v21, 0  ;;  %v3553_v21 = vld [vmem:[#allocation6 + $0xc4] ss:$8 sps:$4 sm:$0xff]  }
 0x48b   :  { %v1539_v55 = vrot.slane %v1538_v48, 1  ;;  %v1563_v54 = vadd.f32 %v1562_v46, %v1561_v42  ;;  %v1553_v56 = vadd.f32 %v1552_v49, %v1551_v43  ;;  %v1576_v57 = vrot.slane %v1575_v51, 2  ;;  %v3514_v49 = vld [vmem:[#allocation7 + $0x18] ss:$0 sps:$4 sm:$0xff]  }
 0x48c   :  { %v1546_v58 = vrot.slane %v1545_v52, 1  ;;  %v1570_v59 = vadd.f32 %v1569_v53, %v1568_v47 }
 0x48d   :  { %v1564_v60 = vrot.slane %v1563_v54, 1  ;;  %v1554_v61 = vrot.slane %v1553_v56, 1  ;;  %v1577_v62 = vadd.f32 %v1576_v57, %v1575_v51  ;;  %v1540_v0 = vadd.f32 %v1539_v55, %v1538_v48  ;;  %v3520_v57 = vld [vmem:[#allocation6 + $0x14] ss:$8 sps:$4 sm:$0xff]  }
 0x48e   :  { %v1571_v63 = vrot.slane %v1570_v59, 1  ;;  %v1547_v4 = vadd.f32 %v1546_v58, %v1545_v52  ;;  %v1892_v55 = vsel %vm680_vm4, %v3514_v49, 0  ;;  %v3523_v58 = vld [vmem:[#allocation6 + $0x24] ss:$8 sps:$4 sm:$0xff]  }
 0x48f   :  { %v1565_v1 = vadd.f32 %v1564_v60, %v1563_v54  ;;  %v1578_v3 = vrot.slane %v1577_v62, 1  ;;  %v1555_v6 = vadd.f32 %v1554_v61, %v1553_v56  ;;  %v3515_v54 = vld [vmem:[#allocation6] ss:$8 sps:$4 sm:$0xff]   ;;  %v3517_v56 = vld [vmem:[#allocation6 + $0x4] ss:$8 sps:$4 sm:$0xff]  }
 0x490   :  { %v1572_v5 = vadd.f32 %v1571_v63, %v1570_v59  ;;  %v3521_v59 = vld [vmem:[#allocation6 + $0x20] ss:$8 sps:$4 sm:$0xff]   ;;  %v3526_v60 = vld [vmem:[#allocation6 + $0x34] ss:$8 sps:$4 sm:$0xff]   ;;  %v3524_v61 = vld [vmem:[#allocation6 + $0x30] ss:$8 sps:$4 sm:$0xff]  }
 0x491   :  { %v1579_v7 = vadd.f32 %v1578_v3, %v1577_v62  ;;  %v1580_v8 = vsel %vm326_vm3, %v1540_v0, %v1565_v1  ;;  %v3529_v62 = vld [vmem:[#allocation6 + $0x44] ss:$8 sps:$4 sm:$0xff]   ;;  %v3527_v63 = vld [vmem:[#allocation6 + $0x40] ss:$8 sps:$4 sm:$0xff]   ;;  %v3532_v0 = vld [vmem:[#allocation6 + $0x54] ss:$8 sps:$4 sm:$0xff]  }
 0x492   :  { %v1581_v9 = vsel %vm326_vm3, %v1547_v4, %v1572_v5  ;;  %v1583_v13 = vpack.c.bf16 %v1580_v8, %v1580_v8  ;;  %v3530_v1 = vld [vmem:[#allocation6 + $0x50] ss:$8 sps:$4 sm:$0xff]   ;;  %v3535_v3 = vld [vmem:[#allocation6 + $0x64] ss:$8 sps:$4 sm:$0xff]   ;;  %v3533_v4 = vld [vmem:[#allocation6 + $0x60] ss:$8 sps:$4 sm:$0xff]  }
 0x493   :  { %v1584_v10 = vpack.c.bf16 %v1581_v9, %v1581_v9  ;;  %v1582_v11 = vsel %vm326_vm3, %v1555_v6, %v1579_v7  ;;  %v3538_v5 = vld [vmem:[#allocation6 + $0x74] ss:$8 sps:$4 sm:$0xff]   ;;  %v3536_v6 = vld [vmem:[#allocation6 + $0x70] ss:$8 sps:$4 sm:$0xff]   ;;  %v3541_v7 = vld [vmem:[#allocation6 + $0x84] ss:$8 sps:$4 sm:$0xff]  }
 0x494   :  { %v1585_v14 = vpack.c.bf16 %v1582_v11, %v1582_v11  ;;  %v3539_v8 = vld [vmem:[#allocation6 + $0x80] ss:$8 sps:$4 sm:$0xff]   ;;  %v3544_v9 = vld [vmem:[#allocation6 + $0x94] ss:$8 sps:$4 sm:$0xff]   ;;  %v3547_v11 = vld [vmem:[#allocation6 + $0xa4] ss:$8 sps:$4 sm:$0xff]  }
 0x495   :  { %1797 = vmatprep.mubr.bf16.mxu1 %v1584_v10  ;;  %v3542_v10 = vld [vmem:[#allocation6 + $0x90] ss:$8 sps:$4 sm:$0xff]  }
 0x496   :  { %1798 = vmatmul.mubr.bf16.vlgmr.msra.gmra.mrb[20].mxu1 %v1583_v13  ;;  %3280 = vmatmul.mubr.msk.bf16.vlgmr.msra.gmra.mrb[16].mxu0 %vm831_vm6, %v1585_v14  ;;  %v3545_v13 = vld [vmem:[#allocation6 + $0xa0] ss:$8 sps:$4 sm:$0xff]   ;;  %v3550_v14 = vld [vmem:[#allocation6 + $0xb4] ss:$8 sps:$4 sm:$0xff]  }
 0x497   :  { %1926 = vmatprep.mubr.bf16.mxu1 %v3705_v2  ;;  %1895 = vmatpush1.bf16.msra.mxu1 %v1886_v22  ;;  %v3556_v22 = vld [vmem:[#allocation6 + $0xd4] ss:$8 sps:$4 sm:$0xff]  }
 0x498   :  { %3283 = vmatprep.subr.bf16.mxu1 %v3707_v50 }
 0x569   :  { %v3227_v23 = vpop.f32.mrb[20].mxu1  ;;  %v1839_v25 = vpop.f32.mrb[16].mxu0 }
 0x56a   :  { %v3228_v26 = vpop.f32.mrb[21].mxu1  ;;  %v3281_v27 = vpop.f32.mrb[17].mxu0 }
 0x56b   :  { %v3229_v29 = vadd.f32 %v3228_v26, %v3227_v23  ;;  %v3230_v30 = vpop.f32.mrb[22].mxu1  ;;  %v1842_v31 = vpop.f32.mrb[18].mxu0  ;;  %v3554_v23 = vld [vmem:[#allocation6 + $0xd0] ss:$8 sps:$4 sm:$0xff]  }
 0x56c   :  { %v3231_v33 = vpop.f32.mrb[23].mxu1  ;;  %v3282_v34 = vpop.f32.mrb[19].mxu0 }
 0x56d   :  { %v1840_v35 = vadd.f32 %v3229_v29, %v1839_v25  ;;  %v3559_v25 = vld [vmem:[#allocation6 + $0xe4] ss:$8 sps:$4 sm:$0xff]  }
 0x56f   :  { %v1846_v36 = vmul.f32 %v1845_v32, %v1840_v35  ;;  %v3557_v32 = vld [vmem:[#allocation6 + $0xe0] ss:$8 sps:$4 sm:$0xff]  }
 0x571   :  { %v1847_v37 = vmul.f32 %v1846_v36, %v1846_v36 }
 0x573   :  { %v1849_v38 = vrot.slane %v1847_v37, 7 }
 0x575   :  { %v1851_v39 = vsub.f32 %v1846_v36, %v1849_v38 }
 0x577   :  { %v1852_v40 = vmax.f32 %v1851_v39, 0.0 }
 0x579   :  { %v1853_v41 = vadd.f32 %v1852_v40, %v3996_v24 }
 0x57b   :  { %3611 = vrsqrt.f32 %v1853_v41 }
 0x585   :  { %v3612_v42 = vpop.eup %3611 }
 0x586   :  { %v1856_v43 = vrot.slane %v3612_v42, 7  ;;  %v3562_v42 = vld [vmem:[#allocation6 + $0xf4] ss:$8 sps:$4 sm:$0xff]  }
 0x588   :  { %v1858_v44 = vmul.f32 %v1856_v43, %v4002_v28 }
 0x58a   :  { %v1860_v45 = vrot.slane %v1858_v44, 2 }
 0x58c   :  { %v1862_v47 = vmul.f32 %v1860_v45, %v1846_v36 }
 0x58e   :  { %v1864_v48 = vrot.slane %v1862_v47, 5 }
 0x590   :  { %v1866_v46 = vsub.f32 %v4002_v28, %v1864_v48  ;;  %v3518_v28 = vld [vmem:[#allocation6 + $0x10] ss:$8 sps:$4 sm:$0xff]  }
 0x592   :  { %v1868_v51 = vrot.slane %v1866_v46, 2  ;;  %v3565_v46 = vld [vmem:[#allocation6 + $0x104] ss:$8 sps:$4 sm:$0xff]  }
 0x594   :  { %v1870_v52 = vsel %vm326_vm3, %v1860_v45, %v1868_v51 }
 0x595   :  { %v1871_v53 = vpack.c.bf16 %v1870_v52, %v1870_v52 }
 0x597   :  { %3083 = vmatmul.mubr.msk.bf16.vlgmr.msra.gmra.mrb[24].mxu1 %vm676_vm5, %v1871_v53 }
 0x598   :  { %3284 = vmatpush3.bf16.msra.mxu1 %v1892_v55  ;;  %3285 = vmatprep.mubr.msk.bf16.mxu1 %vm3708_vm8, %v3707_v50  ;;  %v3575_v55 = vld [vmem:[%s4595_s5 + $0x200] sm:$0xff]  }
 0x599   :  { %2272 = vmatprep.subr.bf16.mxu1 %v3517_v56  ;;  %3242 = vmatprep.subr.bf16.mxu0 %v3575_v55  ;;  %v3578_v56 = vld [vmem:[%s4595_s5 + $0x1c8] sm:$0xff]  }
 0x59f   :  { %3286 = vmatmul.mubr.msk.bf16.vlgmr.msra.gmra.mrb[28].mxu1 %vm676_vm5, %v1871_v53 }
 0x5a0   :  { %2273 = vmatpush1.bf16.msra.mxu1 %v3515_v54  ;;  %v3577_v54 = vld [vmem:[%s4595_s5 + $0x208] sm:$0xff]  }
 0x5a1   :  { %2274 = vmatprep.subr.bf16.mxu1 %v3520_v57  ;;  %v3579_v57 = vld [vmem:[%s4595_s5 + $0x210] sm:$0xff]  }
 0x5a4   :  { %2275 = vmatpush1.bf16.msra.mxu1 %v3518_v28  ;;  %v3580_v28 = vld [vmem:[%s4595_s5 + $0x1d0] sm:$0xff]  }
 0x5a5   :  { %2276 = vmatprep.subr.bf16.mxu1 %v3523_v58 }
 0x5a8   :  { %2277 = vmatpush1.bf16.msra.mxu1 %v3521_v59 }
 0x5a9   :  { %2278 = vmatprep.subr.bf16.mxu1 %v3526_v60 }
 0x5ac   :  { %2279 = vmatpush1.bf16.msra.mxu1 %v3524_v61 }
 0x5ad   :  { %2280 = vmatprep.subr.bf16.mxu1 %v3529_v62 }
 0x5b0   :  { %2281 = vmatpush1.bf16.msra.mxu1 %v3527_v63 }
 0x5b1   :  { %2282 = vmatprep.subr.bf16.mxu1 %v3532_v0 }
 0x5b4   :  { %2283 = vmatpush1.bf16.msra.mxu1 %v3530_v1 }
 0x5b5   :  { %2284 = vmatprep.subr.bf16.mxu1 %v3535_v3 }
 0x5b8   :  { %2285 = vmatpush1.bf16.msra.mxu1 %v3533_v4  ;;  %v3563_v4 = vld [vmem:[#allocation6 + $0x100] ss:$8 sps:$4 sm:$0xff]  }
 0x5b9   :  { %2286 = vmatprep.subr.bf16.mxu1 %v3538_v5 }
 0x5bc   :  { %2287 = vmatpush1.bf16.msra.mxu1 %v3536_v6  ;;  %v3568_v6 = vld [vmem:[#allocation6 + $0x114] ss:$8 sps:$4 sm:$0xff]  }
 0x5bd   :  { %2288 = vmatprep.subr.bf16.mxu1 %v3541_v7  ;;  %v3566_v7 = vld [vmem:[#allocation6 + $0x110] ss:$8 sps:$4 sm:$0xff]  }
 0x5c0   :  { %2289 = vmatpush1.bf16.msra.mxu1 %v3539_v8  ;;  %v3571_v8 = vld [vmem:[#allocation6 + $0x124] ss:$8 sps:$4 sm:$0xff]  }
 0x5c1   :  { %2290 = vmatprep.subr.bf16.mxu1 %v3544_v9  ;;  %v3569_v9 = vld [vmem:[#allocation6 + $0x120] ss:$8 sps:$4 sm:$0xff]  }
 0x5c4   :  { %2291 = vmatpush1.bf16.msra.mxu1 %v3542_v10  ;;  %v3574_v10 = vld [vmem:[#allocation6 + $0x134] ss:$8 sps:$4 sm:$0xff]  }
 0x5c5   :  { %2292 = vmatprep.subr.bf16.mxu1 %v3547_v11  ;;  %v3572_v11 = vld [vmem:[#allocation6 + $0x130] ss:$8 sps:$4 sm:$0xff]  }
 0x5c8   :  { %2293 = vmatpush1.bf16.msra.mxu1 %v3545_v13 }
 0x5c9   :  { %2294 = vmatprep.subr.bf16.mxu1 %v3550_v14 }
 0x5cc   :  { %2295 = vmatpush1.bf16.msra.mxu1 %v3548_v15  ;;  %v3581_v15 = vld [vmem:[%s4595_s5 + $0x218] sm:$0xff]  }
 0x5cd   :  { %2296 = vmatprep.subr.bf16.mxu1 %v3553_v21  ;;  %v3583_v21 = vld [vmem:[%s4595_s5 + $0x220] sm:$0xff]  }
 0x5d0   :  { %2297 = vmatpush1.bf16.msra.mxu1 %v3551_v18  ;;  %v3582_v18 = vld [vmem:[%s4595_s5 + $0x1d8] sm:$0xff]  }
 0x5d1   :  { %2298 = vmatprep.subr.bf16.mxu1 %v3556_v22  ;;  %v3584_v22 = vld [vmem:[%s4595_s5 + $0x1e0] sm:$0xff]  }
 0x5d4   :  { %2299 = vmatpush1.bf16.msra.mxu1 %v3554_v23  ;;  %v3585_v23 = vld [vmem:[%s4595_s5 + $0x228] sm:$0xff]  }
 0x5d5   :  { %2300 = vmatprep.subr.bf16.mxu1 %v3559_v25  ;;  %v3586_v25 = vld [vmem:[%s4595_s5 + $0x1e8] sm:$0xff]  }
 0x5d8   :  { %2301 = vmatpush1.bf16.msra.mxu1 %v3557_v32 }
 0x5d9   :  { %2302 = vmatprep.subr.bf16.mxu1 %v3562_v42 }
 0x66a   :  { %v1928_v26 = vpop.f32.mrb[24].mxu1 }
 0x66b   :  { %v1978_v27 = vrot.slane %v1928_v26, %v4129_v19  ;;  %v1930_v29 = vpop.f32.mrb[25].mxu1  ;;  %v1993_v34 = vrot.slane %v1928_v26, %v4131_v20  ;;  %v3587_v26 = vld [vmem:[%s4595_s5 + $0x230] sm:$0xff]  }
 0x66c   :  { %v1982_v30 = vrot.slane %v1930_v29, %v4129_v19  ;;  %v1932_v31 = vpop.f32.mrb[26].mxu1  ;;  %v1997_v37 = vrot.slane %v1930_v29, %v4131_v20  ;;  %v3589_v29 = vld [vmem:[%s4595_s5 + $0x238] sm:$0xff]  }
 0x66d   :  { %v1987_v33 = vmul.f32 %v1978_v27, %v4370_v12  ;;  %v1933_v35 = vpop.f32.mrb[27].mxu1  ;;  %v3560_v12 = vld [vmem:[#allocation6 + $0xf0] ss:$8 sps:$4 sm:$0xff]  }
 0x66e   :  { %v1988_v36 = vmul.f32 %v1982_v30, %v4378_v17  ;;  %2303 = vmatpush1.bf16.msra.mxu1 %v3560_v12  ;;  %v3588_v27 = vld [vmem:[%s4595_s5 + $0x1f0] sm:$0xff]   ;;  %v3590_v30 = vld [vmem:[%s4595_s5 + $0x1f8] sm:$0xff]  }
 0x66f   :  { %v2002_v38 = vadd.f32 %v1993_v34, %v1987_v33  ;;  %2313 = vmatprep.subr.bf16.mxu1 %v3565_v46 }
 0x670   :  { %v2003_v39 = vadd.f32 %v1997_v37, %v1988_v36 }
 0x671   :  { %v2005_v40 = vmax.f32 %v2002_v38, 0.0 }
 0x672   :  { %v1969_v41 = vpop.f32.mrb[28].mxu1  ;;  %v2006_v51 = vmax.f32 %v2003_v39, 0.0 }
 0x673   :  { %v1986_v43 = vrot.slane %v1969_v41, %v4129_v19  ;;  %2011 = vrot.lane.b32.xlu0 %v2005_v40, %s3706_s15  ;;  %v3287_v44 = vpop.f32.mrb[29].mxu1  ;;  %v2001_v17 = vrot.slane %v1969_v41, %v4131_v20 }
 0x674   :  { %v1972_v45 = vpop.f32.mrb[30].mxu1 }
 0x675   :  { %v1989_v47 = vmul.f32 %v1986_v43, %v4376_v16  ;;  %v3288_v48 = vpop.f32.mrb[31].mxu1  ;;  %v3576_v16 = vld [vmem:[%s4595_s5 + $0x1c0] sm:$0xff]   ;;  %s3085_s5 = sld [smem:[#allocation2 + $0x2]] }
 0x676   :  { %3243 = vmatpush3.bf16.msra.mxu0 %v3576_v16 }
 0x677   :  { %v2004_v49 = vadd.f32 %v2001_v17, %v1989_v47  ;;  %3244 = vmatprep.subr.bf16.mxu0 %v3577_v54 }
 0x679   :  { %v2007_v52 = vmax.f32 %v2004_v49, 0.0 }
 0x67a   :  { %3245 = vmatpush3.bf16.msra.mxu0 %v3578_v56 }
 0x67b   :  { %v3320_v53 = vpack.i.bf16 %v2007_v52, %v2006_v51  ;;  %3246 = vmatprep.subr.bf16.mxu0 %v3579_v57 }
 0x67d   :  { %3321 = vrot.lane.b32.xlu1 %v3320_v53, %s3706_s15 }
 0x67e   :  { %3247 = vmatpush3.bf16.msra.mxu0 %v3580_v28 }
 0x67f   :  { %3248 = vmatprep.subr.bf16.mxu0 %v3581_v15 }
 0x682   :  { %3249 = vmatpush3.bf16.msra.mxu0 %v3582_v18 }
 0x683   :  { %3250 = vmatprep.subr.bf16.mxu0 %v3583_v21 }
 0x686   :  { %3251 = vmatpush3.bf16.msra.mxu0 %v3584_v22 }
 0x687   :  { %3252 = vmatprep.subr.bf16.mxu0 %v3585_v23 }
 0x68a   :  { %3253 = vmatpush3.bf16.msra.mxu0 %v3586_v25 }
 0x68b   :  { %3254 = vmatprep.subr.bf16.mxu0 %v3587_v26 }
 0x68e   :  { %3255 = vmatpush3.bf16.msra.mxu0 %v3588_v27  ;;  %v3615_v27 = vld [vmem:[%s4597_s7] sm:$0x3f] }
 0x68f   :  { %3256 = vmatprep.subr.bf16.mxu0 %v3589_v29 }
 0x692   :  { %3257 = vmatpush3.bf16.msra.mxu0 %v3590_v30 }
 0x6e5   :  { %v2012_v61 = vpop.permute.xlu0 %2011 }
 0x6ef   :  { %v3322_v58 = vpop.permute.xlu1 %3321 }
 0x6f0   :  { %v3324_v59 = vunpack.i.h.bf16 %v3322_v58  ;;  %v3323_v60 = vunpack.i.l.bf16 %v3322_v58 }
 0x6f2   :  { %v2017_v62 = vsel %vm831_vm6, %v2012_v61, %v3323_v60  ;;  %v2018_v63 = vsel %vm831_vm6, %v3323_v60, %v3324_v59  ;;  %v2024_v13 = vmax.f32 %v2007_v52, %v3324_v59 }
 0x6f3   :  { %v2022_v0 = vmax.f32 %v2005_v40, %v2017_v62  ;;  %v2023_v1 = vmax.f32 %v2006_v51, %v2018_v63 }
 0x6f4   :  { %v2028_v14 = vpack.c.bf16 %v2024_v13, %v2024_v13 }
 0x6f5   :  { %v2027_v3 = vpack.c.bf16 %v2023_v1, %v2023_v1  ;;  %v2026_v5 = vpack.c.bf16 %v2022_v0, %v2022_v0 }
 0x6f7   :  { %2304 = vmatprep.mubr.bf16.mxu1 %v2027_v3  ;;  %v2583_v3 = vld [vmem:[#allocation7 + $0x1c] sm:$0xff] }
 0x6f8   :  { %2305 = vmatmul.mubr.bf16.vlgmr.msra.gmra.mrb[32].mxu1 %v2026_v5  ;;  %v3143_v5 = vcombine.low %v2583_v3, %v2583_v3 }
 0x6f9   :  { %2314 = vmatpush1.bf16.msra.mxu1 %v3563_v4  ;;  %2345 = vmatprep.mubr.bf16.mxu1 %v3705_v2  ;;  %v3144_v4 = vcombine.high %v2583_v3, %v2583_v3 }
 0x6fa   :  { %2315 = vmatprep.subr.bf16.mxu1 %v3568_v6  ;;  %v2593_v6 = vsel %vm680_vm4, %v3143_v5, 0  ;;  %v3608_v5 = vld [vmem:[%s4599_s9 + $0x8] sm:$0xff]  }
 0x6fb   :  { %3145 = vmatprep.subr.msk.bf16.mxu0 %vm680_vm4, %v3144_v4 }
 0x6fd   :  { %2316 = vmatpush1.bf16.msra.mxu1 %v3566_v7 }
 0x6fe   :  { %2317 = vmatprep.subr.bf16.mxu1 %v3571_v8 }
 0x701   :  { %2318 = vmatpush1.bf16.msra.mxu1 %v3569_v9  ;;  %v2556_v9 = vstv %s3085_s5 }
 0x702   :  { %2319 = vmatprep.subr.bf16.mxu1 %v3574_v10 }
 0x705   :  { %2320 = vmatpush1.bf16.msra.mxu1 %v3572_v11 }
 0x706   :  { %3289 = vmatprep.subr.bf16.mxu1 %v3707_v50 }
 0x708   :  { %3126 = vmatmul.mubr.msk.bf16.vlgmr.msra.gmra.mrb[32].mxu1 %vm178_vm0, %v2028_v14 }
 0x709   :  { %3293 = vmatprep.mubr.msk.bf16.mxu1 %vm3708_vm8, %v3707_v50 }
 0x7db   :  { %v4474_v31 = vpop.f32.mrb[32].mxu1 }
 0x7dc   :  { %v2354_v32 = vsel %vm264_vm1, %v4474_v31, 0.0  ;;  %v2368_v33 = vmul.f32 %v4474_v31, %v4474_v31  ;;  %v4480_v34 = vpop.f32.mrb[33].mxu1 }
 0x7dd   :  { %v2355_v35 = vrot.slane %v2354_v32, 4  ;;  %v2361_v36 = vsel %vm264_vm1, %v4480_v34, 0.0  ;;  %v2369_v37 = vmul.f32 %v4480_v34, %v4480_v34  ;;  %v2351_v38 = vpop.f32.mrb[34].mxu1 }
 0x7de   :  { %v2370_v39 = vsel %vm264_vm1, %v2368_v33, 0.0  ;;  %v2362_v40 = vrot.slane %v2361_v36, 4  ;;  %v2352_v41 = vpop.f32.mrb[35].mxu1 }
 0x7df   :  { %v2356_v42 = vadd.f32 %v2355_v35, %v2354_v32  ;;  %v2371_v43 = vrot.slane %v2370_v39, 4  ;;  %v2377_v44 = vsel %vm264_vm1, %v2369_v37, 0.0  ;;  %v3596_v41 = vld [vmem:[%s4598_s8 + $0x18] sm:$0xff]  }
 0x7e0   :  { %v2363_v12 = vadd.f32 %v2362_v40, %v2361_v36  ;;  %v2378_v45 = vrot.slane %v2377_v44, 4  ;;  %v3595_v40 = vld [vmem:[%s4598_s8 + $0x10] sm:$0xff]  }
 0x7e1   :  { %v2357_v47 = vrot.slane %v2356_v42, 2  ;;  %v2372_v17 = vadd.f32 %v2371_v43, %v2370_v39  ;;  %v3594_v39 = vld [vmem:[%s4598_s8 + $0x8] sm:$0xff]  }
 0x7e2   :  { %v2364_v48 = vrot.slane %v2363_v12, 2  ;;  %v2379_v46 = vadd.f32 %v2378_v45, %v2377_v44  ;;  %v3598_v43 = vld [vmem:[%s4598_s8 + $0x28] sm:$0xff]   ;;  %v3599_v44 = vld [vmem:[%s4598_s8 + $0x30] sm:$0xff]   ;;  %v3601_v45 = vld [vmem:[%s4598_s8 + $0x40] sm:$0xff]  }
 0x7e3   :  { %v2358_v49 = vadd.f32 %v2357_v47, %v2356_v42  ;;  %v2373_v51 = vrot.slane %v2372_v17, 2  ;;  %v3597_v42 = vld [vmem:[%s4598_s8 + $0x20] sm:$0xff]   ;;  %v3602_v47 = vld [vmem:[%s4598_s8 + $0x48] sm:$0xff]  }
 0x7e4   :  { %v2365_v52 = vadd.f32 %v2364_v48, %v2363_v12  ;;  %v2380_v53 = vrot.slane %v2379_v46, 2  ;;  %v3600_v12 = vld [vmem:[%s4598_s8 + $0x38] sm:$0xff]  }
 0x7e5   :  { %v2359_v55 = vrot.slane %v2358_v49, 1  ;;  %v2374_v16 = vadd.f32 %v2373_v51, %v2372_v17  ;;  %v3603_v17 = vld [vmem:[%s4598_s8 + $0x50] sm:$0xff]   ;;  %v3604_v48 = vld [vmem:[%s4598_s8 + $0x58] sm:$0xff]  }
 0x7e6   :  { %v2366_v54 = vrot.slane %v2365_v52, 1  ;;  %v2381_v56 = vadd.f32 %v2380_v53, %v2379_v46  ;;  %v3605_v46 = vld [vmem:[%s4598_s8 + $0x60] sm:$0xff]   ;;  %v3606_v53 = vld [vmem:[%s4598_s8 + $0x68] sm:$0xff]  }
 0x7e7   :  { %v2375_v57 = vrot.slane %v2374_v16, 1  ;;  %v2360_v58 = vadd.f32 %v2359_v55, %v2358_v49 }
 0x7e8   :  { %v2382_v28 = vrot.slane %v2381_v56, 1  ;;  %v2367_v60 = vadd.f32 %v2366_v54, %v2365_v52 }
 0x7e9   :  { %v2376_v59 = vadd.f32 %v2375_v57, %v2374_v16 }
 0x7ea   :  { %v2383_v61 = vadd.f32 %v2382_v28, %v2381_v56 }
 0x7eb   :  { %v2384_v62 = vsel %vm326_vm3, %v2360_v58, %v2376_v59 }
 0x7ec   :  { %v2385_v63 = vsel %vm326_vm3, %v2367_v60, %v2383_v61  ;;  %v2386_v1 = vpack.c.bf16 %v2384_v62, %v2384_v62  ;;  %v3607_v60 = vld [vmem:[%s4599_s9] sm:$0xff]   ;;  %s2908_s9 = sshll.u32 %s3709_s17, 4  ;;  %s2909_s9 = int_to_ptr.vmem [resolvable:$true] %s2908_s9 }
 0x7ed   :  { %v2387_v0 = vpack.c.bf16 %v2385_v63, %v2385_v63  ;;  %3290 = vmatpush3.bf16.msra.mxu1 %v3607_v60  ;;  %s3670_s0 = scalar_lea.vmem %s2909_s9, 32  ;;  %p3675_p6 = scmp.lt.s32.totalorder %s2909_s9, %s2909_s9 }
 0x7ee   :  { %3291 = vmatprep.subr.bf16.mxu1 %v3707_v50  ;;  %v3147_v50 = vld [vmem:[%s4600_s10] ss:$0 sm:$0xff]  ;;  %p3671_p5 = scmp.ne.s32.totalorder %s2909_s9, %s3670_s0  ;;  %p3676_p7 = scmp.lt.s32.totalorder %s3670_s0, %s3670_s0 }
 0x7ef   :  { %2548 = vmatprep.mubr.bf16.mxu0 %v2387_v0 }
 0x7f0   :  { %2549 = vmatmul.mubr.bf16.vlgmr.msra.gmra.mrb[20].mxu0 %v2386_v1  ;;  %p3677_p8 = por %p3676_p7, %p3675_p6 }
 0x7f1   :  { %2630 = vmatprep.mubr.bf16.mxu0 %v3705_v2  ;;  %2599 = vmatpush1.bf16.msra.mxu0 %v2593_v6 }
 0x7f2   :  { %2794 = vmatprep.subr.bf16.mxu0 %v3705_v2  ;;  %3292 = vmatpush3.bf16.msra.mxu1 %v3608_v5  ;;  %p3678_p9 = pnand %p3677_p8, %p3671_p5 }
 0x8c3   :  { %v3258_v7 = vpop.f32.mrb[20].mxu0 }
 0x8c4   :  { %v3259_v8 = vpop.f32.mrb[21].mxu0 }
 0x8c5   :  { %v3260_v10 = vadd.f32 %v3259_v8, %v3258_v7  ;;  %v3261_v11 = vpop.f32.mrb[22].mxu0 }
 0x8c6   :  { %v3262_v13 = vpop.f32.mrb[23].mxu0 }
 0x8c7   :  { %v2557_v14 = vmul.f32 %v3260_v10, %v2556_v9 }
 0x8c9   :  { %v2558_v15 = vmul.f32 %v2557_v14, %v2557_v14 }
 0x8cb   :  { %v2560_v18 = vrot.slane %v2558_v15, 7 }
 0x8cd   :  { %v2562_v21 = vsub.f32 %v2557_v14, %v2560_v18 }
 0x8cf   :  { %v2563_v22 = vmax.f32 %v2562_v21, 0.0 }
 0x8d1   :  { %v2564_v23 = vadd.f32 %v2563_v22, %v3996_v24  ;;  %v3593_v24 = vld [vmem:[%s4598_s8] sm:$0xff]  }
 0x8d3   :  { %3613 = vrsqrt.f32 %v2564_v23 }
 0x8dd   :  { %v3614_v25 = vpop.eup %3613 }
 0x8de   :  { %v2567_v26 = vrot.slane %v3614_v25, 5 }
 0x8e0   :  { %v2569_v29 = vmul.f32 %v3615_v27, %v2567_v26 }
 0x8e2   :  { %v2571_v30 = vrot.slane %v2569_v29, 4 }
 0x8e4   :  { %v2573_v32 = vmul.f32 %v2571_v30, %v2557_v14  ;;  %v3163_v14 = vld [vmem:[%s4600_s10 + $0x1] ss:$0 sm:$0xff] }
 0x8e6   :  { %v2575_v33 = vrot.slane %v2573_v32, 3 }
 0x8e8   :  { %v2577_v35 = vsub.f32 %v3615_v27, %v2575_v33 }
 0x8ea   :  { %v2579_v36 = vrot.slane %v2577_v35, 4 }
 0x8ec   :  { %v2581_v37 = vsel %vm326_vm3, %v2571_v30, %v2579_v36 }
 0x8ed   :  { %v2582_v38 = vpack.c.bf16 %v2581_v37, %v2581_v37 }
 0x8ef   :  { %3146 = vmatmul.mubr.msk.bf16.vlgmr.msra.gmra.mrb[24].mxu0 %vm676_vm5, %v2582_v38 }
 0x8f0   :  { %2795 = vmatpush1.bf16.msra.mxu0 %v3593_v24 }
 0x8f1   :  { %2796 = vmatprep.subr.bf16.mxu0 %v3705_v2 }
 0x8f4   :  { %2797 = vmatpush1.bf16.msra.mxu0 %v3594_v39 }
 0x8f5   :  { %2798 = vmatprep.subr.bf16.mxu0 %v3705_v2 }
 0x8f8   :  { %2799 = vmatpush1.bf16.msra.mxu0 %v3595_v40 }
 0x8f9   :  { %2800 = vmatprep.subr.bf16.mxu0 %v3705_v2 }
 0x8fc   :  { %2801 = vmatpush1.bf16.msra.mxu0 %v3596_v41 }
 0x8fd   :  { %2802 = vmatprep.subr.bf16.mxu0 %v3705_v2 }
 0x900   :  { %2803 = vmatpush1.bf16.msra.mxu0 %v3597_v42 }
 0x901   :  { %2804 = vmatprep.subr.bf16.mxu0 %v3705_v2 }
 0x904   :  { %2805 = vmatpush1.bf16.msra.mxu0 %v3598_v43 }
 0x905   :  { %2806 = vmatprep.subr.bf16.mxu0 %v3705_v2 }
 0x908   :  { %2807 = vmatpush1.bf16.msra.mxu0 %v3599_v44 }
 0x909   :  { %2808 = vmatprep.subr.bf16.mxu0 %v3705_v2 }
 0x90c   :  { %2809 = vmatpush1.bf16.msra.mxu0 %v3600_v12 }
 0x90d   :  { %2810 = vmatprep.subr.bf16.mxu0 %v3705_v2 }
 0x910   :  { %2811 = vmatpush1.bf16.msra.mxu0 %v3601_v45 }
 0x911   :  { %2812 = vmatprep.subr.bf16.mxu0 %v3705_v2 }
 0x914   :  { %2813 = vmatpush1.bf16.msra.mxu0 %v3602_v47 }
 0x915   :  { %2814 = vmatprep.subr.bf16.mxu0 %v3705_v2 }
 0x918   :  { %2815 = vmatpush1.bf16.msra.mxu0 %v3603_v17 }
 0x919   :  { %2816 = vmatprep.subr.bf16.mxu0 %v3705_v2 }
 0x91c   :  { %2817 = vmatpush1.bf16.msra.mxu0 %v3604_v48 }
 0x91d   :  { %2818 = vmatprep.subr.bf16.mxu0 %v3705_v2 }
 0x920   :  { %2819 = vmatpush1.bf16.msra.mxu0 %v3605_v46 }
 0x921   :  { %2820 = vmatprep.subr.bf16.mxu0 %v3705_v2 }
 0x924   :  { %2821 = vmatpush1.bf16.msra.mxu0 %v3606_v53 }
 0x9c2   :  { %v2632_v49 = vpop.f32.mrb[24].mxu0 }
 0x9c3   :  { %v2642_v51 = vrot.slane %v2632_v49, %v4129_v19  ;;  %v2634_v52 = vpop.f32.mrb[25].mxu0  ;;  %v2652_v56 = vrot.slane %v2632_v49, %v4131_v20 }
 0x9c4   :  { %v2646_v55 = vrot.slane %v2634_v52, %v4129_v19  ;;  %v2636_v16 = vpop.f32.mrb[26].mxu0  ;;  %v2656_v2 = vrot.slane %v2634_v52, %v4131_v20 }
 0x9c5   :  { %v2647_v54 = vmul.f32 %v2642_v51, %v4474_v31  ;;  %v2637_v57 = vpop.f32.mrb[27].mxu0 }
 0x9c6   :  { %v2648_v28 = vmul.f32 %v2646_v55, %v4480_v34 }
 0x9c7   :  { %v2657_v58 = vadd.f32 %v2652_v56, %v2647_v54 }
 0x9c8   :  { %v2658_v59 = vadd.f32 %v2656_v2, %v2648_v28 }
 0x9c9   :  { %v2659_v61 = vmax.f32 %v2657_v58, 0.0 }
 0x9ca   :  { %v2660_v62 = vmax.f32 %v2658_v59, 0.0 }
 0x9cc   :  { %v3325_v19 = vpack.i.bf16 %v2660_v62, %v2659_v61 }
 0x9ce   :  { %3326 = vrot.lane.b32.xlu1 %v3325_v19, %s3706_s15 }
 0xa40   :  { %v3327_v31 = vpop.permute.xlu1 %3326 }
 0xa41   :  { %v3329_v63 = vunpack.i.h.bf16 %v3327_v31  ;;  %v3328_v0 = vunpack.i.l.bf16 %v3327_v31 }
 0xa43   :  { %v2671_v34 = vmax.f32 %v2660_v62, %v3329_v63  ;;  %v2667_v20 = vsel %vm831_vm6, %v3328_v0, %v3329_v63 }
 0xa44   :  { %v2670_v1 = vmax.f32 %v2659_v61, %v2667_v20 }
 0xa45   :  { %v2673_v3 = vpack.c.bf16 %v2671_v34, %v2671_v34 }
 0xa46   :  { %v2672_v4 = vpack.c.bf16 %v2670_v1, %v2670_v1 }
 0xa47   :  { %3162 = vmatprep.mubr.msk.bf16.mxu0 %vm831_vm6, %v2673_v3 }
 0xa48   :  { %2827 = vmatmul.mubr.bf16.vlgmr.msra.gmra.mrb[28].mxu0 %v2672_v4 }
 0xb1b   :  { %v2828_v6 = vpop.f32.mrb[28].mxu0 }
 0xb1c   :  { %v2829_v7 = vadd.f32 %v3147_v50, %v2828_v6  ;;  %v2830_v8 = vpop.f32.mrb[29].mxu0 }
 0xb1d   :  { %v2831_v9 = vpop.f32.mrb[30].mxu0 }
 0xb1e   :  { %v2834_v10 = vmax.f32 %v2829_v7, 0.0  ;;  %v2832_v11 = vpop.f32.mrb[31].mxu0 }
 0xb20   :  { %v2835_v13 = vpack.c.bf16 %v2834_v10, %v2834_v10 }
 0xb22   :  { %3294 = vmatmul.mubr.msk.bf16.vlgmr.msra.gmra.mrb[36].mxu1 %vm1368_vm7, %v2835_v13 }
 0xbf5   :  { %v2894_v15 = vpop.f32.mrb[36].mxu1 }
 0xbf6   :  { %v2895_v18 = vadd.f32 %v3163_v14, %v2894_v15  ;;  %v3295_v21 = vpop.f32.mrb[37].mxu1 }
 0xbf7   :  { %v2897_v22 = vpop.f32.mrb[38].mxu1 }
 0xbf8   :  { %v3296_v23 = vpop.f32.mrb[39].mxu1  ;;  %2901 = vst.msk [vmem:[#allocation9] sm:$0x3] %vm2900_vm10, %v2895_v18 }
 0xbf9   :  { %3681 = shalt.err (!%p3678_p9)
}
 0xbfa   :  { %s3682_s10 = scalar_lea.hbm %s4601_s11, 32 }
 0xbfb   :  { %p3683_p10 = scmp.ne.s32.totalorder %s4601_s11, %s3682_s10  ;;  %p3686_p11 = scmp.lt.u32.totalorder %s3682_s10, %s4601_s11 }
 0xbfd   :  { %p3688_p12 = pnand %p3686_p11, %p3683_p10 }
 0xbff   :  { %3691 = shalt.err (!%p3688_p12)
}
 0xc00   :  { %2911 = dma.vmem_to_hbm [thread:$0]  %s2909_s9, 32, %s4601_s11, [#allocation4]  }
 0xc01   :  { %3698 = dma.done.wait [#allocation4], 32  }
 0xc02   :  { %3699 = vsyncadd [#allocation4], 4294967264 }
 0xc03   :  { %2915 = vsyncpa [#allocation3], 1 }
 0xc04   :  { %2916 = vsyncpa [#allocation8], 1 }
 0xc05   :  { %2917 = vsyncpa [#allocation4], 1 }
 0xc06   :  { %2918 = vsyncpa [#allocation5], 1 }

</bundles_post_ra>
